<compile_context>
chip_gen: v5e
topology: v5e:2x2
jax: 0.10.0
libtpu: 0.0.40
codegen_flags: <defaults>
</compile_context>

<pallas_src>
import functools

import jax
import jax.numpy as jnp
from jax.experimental import pallas as pl
from jax.experimental.pallas import tpu as pltpu


NEG_SLOPE = 0.01  # torch.nn.LeakyReLU() default negative_slope


def _cdiv(a, b):
    return -(-a // b)


def _round_up(n, m):
    return _cdiv(n, m) * m


def _bowl_kernel(x_ref, w1_ref, w2t_ref, b2_ref, o_ref, *, chunk):
    """One batch tile.

    x_ref  : (tm, k_pad)        x with a ones column (+ zero pad) appended
    w1_ref : (k_pad, nc_pad)    W1 with b1 as an extra input row, zero-padded
    w2t_ref: (o_feat, nc_pad)   W2^T, zero-padded along nc
    b2_ref : (o_feat, 1)
    o_ref  : (o_feat, tm)       output, transposed (batch on the lane axis)
    """
    tm = x_ref.shape[0]
    o_feat = o_ref.shape[0]
    nc_pad = w1_ref.shape[1]
    cdt = w1_ref.dtype                        # MXU operand dtype (bf16 or f32)

    x = x_ref[...]                            # (tm, k_pad), already cdt
    acc = jnp.zeros((o_feat, tm), jnp.float32)

    # nc-chunked: never materialize the full (nc, tm) hidden activation;
    # MXU work of chunk c+1 overlaps the VPU/store work of chunk c.
    for c in range(nc_pad // chunk):          # static unroll, 128-aligned slices
        w1c = w1_ref[:, c * chunk:(c + 1) * chunk]        # (k_pad, chunk)
        # hidden chunk (natural layout): (tm, chunk); f32 MXU accumulation.
        # b1 rides in via the ones column of x (bias fold).
        h = jnp.dot(x, w1c, preferred_element_type=jnp.float32)
        h = jnp.maximum(h, NEG_SLOPE * h)                 # LeakyReLU(0.01)
        # partial output (transposed): (o_feat, tm) += W2T_c @ h^T
        w2c = w2t_ref[:, c * chunk:(c + 1) * chunk]       # (o_feat, chunk)
        acc = acc + jax.lax.dot_general(
            w2c, h.astype(cdt),
            dimension_numbers=(((1,), (1,)), ((), ())),
            preferred_element_type=jnp.float32)

    o_ref[...] = (acc + b2_ref[...]).astype(o_ref.dtype)


def nonlinear_bowl_mode(x, w1, b1, w2, b2, *, num_sheets, out_nc,
                        tm=2048, chunk=128, matmul_dtype=jnp.bfloat16):
    """x: (B, in_nc); w1: (in_nc, nc); b1: (nc,); w2: (nc, out_nc*num_sheets);
    b2: (out_nc*num_sheets,).  Returns (B, num_sheets, out_nc) float32.

    matmul_dtype: MXU operand dtype (accumulation is always f32). bf16 is the
    fast path on v5e/v6e/v7x; pass jnp.float32 for exact f32 math.
    """
    B, in_nc = x.shape
    nc = w1.shape[1]
    o_feat = w2.shape[1]
    assert o_feat == out_nc * num_sheets
    assert chunk % 128 == 0

    wdt = jnp.dtype(matmul_dtype) if matmul_dtype is not None else jnp.dtype(jnp.float32)

    # ---- batch tiling: tm multiple of 128 (output lane dim); >= 2 grid steps
    # when the batch allows (keeps both v7x TCs busy); minimal ragged padding.
    b_ru = _round_up(B, 128)
    n_steps = _cdiv(b_ru, tm)
    if n_steps == 1 and b_ru >= 256:
        n_steps = 2
    tm = _round_up(_cdiv(b_ru, n_steps), 128)
    b_pad = n_steps * tm

    in_aug = in_nc + 1                       # +1 ones column for the b1 fold
    k_pad = _round_up(in_aug, 8)             # native sublane multiple
    nc_pad = _round_up(nc, chunk)            # 128-aligned in-kernel chunks

    # ---- operand prep (cheap, natural layouts; no transpose of x) ----------
    # Zero-padded hidden units (nc -> nc_pad) are exactly zero and their W2
    # rows are zero, so they contribute nothing.
    w1_aug = jnp.concatenate([w1, b1.reshape(1, nc)], axis=0)        # (in_aug, nc)
    w1_aug = jnp.pad(w1_aug, ((0, k_pad - in_aug), (0, nc_pad - nc))).astype(wdt)
    w2_t = jnp.pad(w2.T, ((0, 0), (0, nc_pad - nc))).astype(wdt)     # (o_feat, nc_pad)
    b2_c = b2.reshape(o_feat, 1).astype(jnp.float32)

    # x with a ones column; single fused elementwise/pad op over a tiny array.
    x_aug = jnp.concatenate([x.astype(wdt), jnp.ones((B, 1), wdt)], axis=1)
    x_aug = jnp.pad(x_aug, ((0, b_pad - B), (0, k_pad - in_aug)))

    grid = (b_pad // tm,)

    cost = pl.CostEstimate(
        flops=2 * b_pad * nc_pad * (k_pad + o_feat),
        transcendentals=0,
        bytes_accessed=int((x_aug.size + w1_aug.size + w2_t.size) * wdt.itemsize
                           + (b2_c.size + o_feat * b_pad) * 4),
    )

    kernel = functools.partial(_bowl_kernel, chunk=chunk)

    out_t = pl.pallas_call(
        kernel,
        out_shape=jax.ShapeDtypeStruct((o_feat, b_pad), jnp.float32),
        grid_spec=pltpu.PrefetchScalarGridSpec(
            num_scalar_prefetch=0,
            grid=grid,
            in_specs=[
                pl.BlockSpec((tm, k_pad), lambda i: (i, 0)),        # x tile (natural)
                pl.BlockSpec((k_pad, nc_pad), lambda i: (0, 0)),    # W1(+b1) resident
                pl.BlockSpec((o_feat, nc_pad), lambda i: (0, 0)),   # W2^T resident
                pl.BlockSpec((o_feat, 1), lambda i: (0, 0)),        # b2 resident
            ],
            out_specs=pl.BlockSpec((o_feat, tm), lambda i: (0, i)),
        ),
        compiler_params=pltpu.CompilerParams(
            dimension_semantics=("parallel",),      # shard batch tiles across TCs
            vmem_limit_bytes=32 * 1024 * 1024,      # safe on v5e/v6e/v7x
        ),
        cost_estimate=cost,
    )(x_aug, w1_aug, w2_t, b2_c)

    # Epilogue glue: (o_feat, b_pad) -> (B, o_feat) -> PyTorch's .view(...)
    out = out_t[:, :B].T
    return out.reshape(B, num_sheets, out_nc)


def init_params(key, in_nc=6, nc=1600, out_nc=2, num_sheets=4,
                dtype=jnp.float32):
    """Deterministic init mimicking nn.Linear (uniform in +-1/sqrt(fan_in)).
    Weights stored as (in_features, out_features); biases as vectors."""
    k1, k2, k3, k4 = jax.random.split(key, 4)
    o_feat = out_nc * num_sheets
    lim1 = 1.0 / jnp.sqrt(in_nc)
    lim2 = 1.0 / jnp.sqrt(nc)
    w1 = jax.random.uniform(k1, (in_nc, nc), dtype, -lim1, lim1)
    b1 = jax.random.uniform(k2, (nc,), dtype, -lim1, lim1)
    w2 = jax.random.uniform(k3, (nc, o_feat), dtype, -lim2, lim2)
    b2 = jax.random.uniform(k4, (o_feat,), dtype, -lim2, lim2)
    return w1, b1, w2, b2


if __name__ == "__main__":
    in_nc, nc, out_nc, num_sheets = 6, 1600, 2, 4
    B = 8  # batch

    key = jax.random.PRNGKey(0)
    k_x, k_p = jax.random.split(key)
    x = jax.random.normal(k_x, (B, in_nc), jnp.float32)
    w1, b1, w2, b2 = init_params(k_p, in_nc, nc, out_nc, num_sheets)

    # Pure-JAX reference of the module's forward pass.
    h_ref = x @ w1 + b1
    h_ref = jnp.where(h_ref >= 0, h_ref, NEG_SLOPE * h_ref)
    ref = (h_ref @ w2 + b2).reshape(-1, num_sheets, out_nc)

    # Exact-f32 path: must match the reference tightly.
    out_f32 = nonlinear_bowl_mode(x, w1, b1, w2, b2, num_sheets=num_sheets,
                                  out_nc=out_nc, matmul_dtype=jnp.float32)
    out_f32 = jax.block_until_ready(out_f32)
    assert out_f32.shape == (B, num_sheets, out_nc)
    assert jnp.allclose(out_f32, ref, atol=1e-4, rtol=1e-4)

    # Default fast path (bf16 MXU operands, f32 accumulation): loose check.
    out_bf16 = nonlinear_bowl_mode(x, w1, b1, w2, b2, num_sheets=num_sheets,
                                   out_nc=out_nc)
    out_bf16 = jax.block_until_ready(out_bf16)
    assert out_bf16.shape == (B, num_sheets, out_nc)
    assert bool(jnp.all(jnp.isfinite(out_bf16)))
    assert jnp.allclose(out_bf16, ref, atol=1e-1, rtol=1e-1)

    print("KERNEL_OK")
</pallas_src>

<mosaic_0001>
module attributes {stable_mosaic.version = 11 : i64} {
  func.func @_bowl_kernel(%arg0: i32, %arg1: memref<128x8xf32, #tpu.memory_space<vmem>>, %arg2: memref<8x1664xf32, #tpu.memory_space<vmem>>, %arg3: memref<8x1664xf32, #tpu.memory_space<vmem>>, %arg4: memref<8x1xf32, #tpu.memory_space<vmem>>, %arg5: memref<8x128xf32, #tpu.memory_space<vmem>>) attributes {dimension_semantics = [#tpu.dimension_semantics<parallel>], iteration_bounds = array<i64: 1>, scalar_prefetch = 0 : i64, scratch_operands = 0 : i64, tpu.core_type = #tpu.core_type<tc>, window_params = [{transform_indices = @transform_0, window_bounds = array<i64: 128, 8>}, {pipeline_mode = #tpu.pipeline_mode<synchronous>, transform_indices = @transform_1, window_bounds = array<i64: 8, 1664>}, {pipeline_mode = #tpu.pipeline_mode<synchronous>, transform_indices = @transform_2, window_bounds = array<i64: 8, 1664>}, {pipeline_mode = #tpu.pipeline_mode<synchronous>, transform_indices = @transform_3, window_bounds = array<i64: 8, 1>}, {transform_indices = @transform_4, window_bounds = array<i64: 8, 128>}]} {
    %c0 = arith.constant 0 : index
    %c0_0 = arith.constant 0 : index
    %0 = vector.load %arg1[%c0, %c0_0] : memref<128x8xf32, #tpu.memory_space<vmem>>, vector<128x8xf32>
    %cst = arith.constant 0.000000e+00 : f32
    %1 = vector.broadcast %cst : f32 to vector<8x128xf32>
    %c0_1 = arith.constant 0 : index
    %c0_2 = arith.constant 0 : index
    %2 = vector.load %arg2[%c0_1, %c0_2] : memref<8x1664xf32, #tpu.memory_space<vmem>>, vector<8x128xf32>
    %cst_3 = arith.constant dense<0.000000e+00> : vector<128x128xf32>
    %3 = tpu.matmul %0, %2, %cst_3 {dimension_numbers = #tpu.dot_dimension_numbers<[1], [0], [0], [1], [0, 0, 1, 1], [], []>} : vector<128x8xf32>, vector<8x128xf32>, vector<128x128xf32> -> vector<128x128xf32>
    %cst_4 = arith.constant 0.00999999977 : f32
    %4 = vector.broadcast %cst_4 : f32 to vector<128x128xf32>
    %5 = arith.mulf %4, %3 : vector<128x128xf32>
    %6 = arith.maximumf %3, %5 : vector<128x128xf32>
    %c0_5 = arith.constant 0 : index
    %c0_6 = arith.constant 0 : index
    %7 = vector.load %arg3[%c0_5, %c0_6] : memref<8x1664xf32, #tpu.memory_space<vmem>>, vector<8x128xf32>
    %cst_7 = arith.constant dense<0.000000e+00> : vector<8x128xf32>
    %8 = tpu.matmul %7, %6, %cst_7 {dimension_numbers = #tpu.dot_dimension_numbers<[1], [1], [0], [0], [0, 0, 1, 0], [], []>} : vector<8x128xf32>, vector<128x128xf32>, vector<8x128xf32> -> vector<8x128xf32>
    %9 = arith.addf %1, %8 : vector<8x128xf32>
    %c0_8 = arith.constant 0 : index
    %c128 = arith.constant 128 : index
    %10 = vector.load %arg2[%c0_8, %c128] : memref<8x1664xf32, #tpu.memory_space<vmem>>, vector<8x128xf32>
    %cst_9 = arith.constant dense<0.000000e+00> : vector<128x128xf32>
    %11 = tpu.matmul %0, %10, %cst_9 {dimension_numbers = #tpu.dot_dimension_numbers<[1], [0], [0], [1], [0, 0, 1, 1], [], []>} : vector<128x8xf32>, vector<8x128xf32>, vector<128x128xf32> -> vector<128x128xf32>
    %cst_10 = arith.constant 0.00999999977 : f32
    %12 = vector.broadcast %cst_10 : f32 to vector<128x128xf32>
    %13 = arith.mulf %12, %11 : vector<128x128xf32>
    %14 = arith.maximumf %11, %13 : vector<128x128xf32>
    %c0_11 = arith.constant 0 : index
    %c128_12 = arith.constant 128 : index
    %15 = vector.load %arg3[%c0_11, %c128_12] : memref<8x1664xf32, #tpu.memory_space<vmem>>, vector<8x128xf32>
    %cst_13 = arith.constant dense<0.000000e+00> : vector<8x128xf32>
    %16 = tpu.matmul %15, %14, %cst_13 {dimension_numbers = #tpu.dot_dimension_numbers<[1], [1], [0], [0], [0, 0, 1, 0], [], []>} : vector<8x128xf32>, vector<128x128xf32>, vector<8x128xf32> -> vector<8x128xf32>
    %17 = arith.addf %9, %16 : vector<8x128xf32>
    %c0_14 = arith.constant 0 : index
    %c256 = arith.constant 256 : index
    %18 = vector.load %arg2[%c0_14, %c256] : memref<8x1664xf32, #tpu.memory_space<vmem>>, vector<8x128xf32>
    %cst_15 = arith.constant dense<0.000000e+00> : vector<128x128xf32>
    %19 = tpu.matmul %0, %18, %cst_15 {dimension_numbers = #tpu.dot_dimension_numbers<[1], [0], [0], [1], [0, 0, 1, 1], [], []>} : vector<128x8xf32>, vector<8x128xf32>, vector<128x128xf32> -> vector<128x128xf32>
    %cst_16 = arith.constant 0.00999999977 : f32
    %20 = vector.broadcast %cst_16 : f32 to vector<128x128xf32>
    %21 = arith.mulf %20, %19 : vector<128x128xf32>
    %22 = arith.maximumf %19, %21 : vector<128x128xf32>
    %c0_17 = arith.constant 0 : index
    %c256_18 = arith.constant 256 : index
    %23 = vector.load %arg3[%c0_17, %c256_18] : memref<8x1664xf32, #tpu.memory_space<vmem>>, vector<8x128xf32>
    %cst_19 = arith.constant dense<0.000000e+00> : vector<8x128xf32>
    %24 = tpu.matmul %23, %22, %cst_19 {dimension_numbers = #tpu.dot_dimension_numbers<[1], [1], [0], [0], [0, 0, 1, 0], [], []>} : vector<8x128xf32>, vector<128x128xf32>, vector<8x128xf32> -> vector<8x128xf32>
    %25 = arith.addf %17, %24 : vector<8x128xf32>
    %c0_20 = arith.constant 0 : index
    %c384 = arith.constant 384 : index
    %26 = vector.load %arg2[%c0_20, %c384] : memref<8x1664xf32, #tpu.memory_space<vmem>>, vector<8x128xf32>
    %cst_21 = arith.constant dense<0.000000e+00> : vector<128x128xf32>
    %27 = tpu.matmul %0, %26, %cst_21 {dimension_numbers = #tpu.dot_dimension_numbers<[1], [0], [0], [1], [0, 0, 1, 1], [], []>} : vector<128x8xf32>, vector<8x128xf32>, vector<128x128xf32> -> vector<128x128xf32>
    %cst_22 = arith.constant 0.00999999977 : f32
    %28 = vector.broadcast %cst_22 : f32 to vector<128x128xf32>
    %29 = arith.mulf %28, %27 : vector<128x128xf32>
    %30 = arith.maximumf %27, %29 : vector<128x128xf32>
    %c0_23 = arith.constant 0 : index
    %c384_24 = arith.constant 384 : index
    %31 = vector.load %arg3[%c0_23, %c384_24] : memref<8x1664xf32, #tpu.memory_space<vmem>>, vector<8x128xf32>
    %cst_25 = arith.constant dense<0.000000e+00> : vector<8x128xf32>
    %32 = tpu.matmul %31, %30, %cst_25 {dimension_numbers = #tpu.dot_dimension_numbers<[1], [1], [0], [0], [0, 0, 1, 0], [], []>} : vector<8x128xf32>, vector<128x128xf32>, vector<8x128xf32> -> vector<8x128xf32>
    %33 = arith.addf %25, %32 : vector<8x128xf32>
    %c0_26 = arith.constant 0 : index
    %c512 = arith.constant 512 : index
    %34 = vector.load %arg2[%c0_26, %c512] : memref<8x1664xf32, #tpu.memory_space<vmem>>, vector<8x128xf32>
    %cst_27 = arith.constant dense<0.000000e+00> : vector<128x128xf32>
    %35 = tpu.matmul %0, %34, %cst_27 {dimension_numbers = #tpu.dot_dimension_numbers<[1], [0], [0], [1], [0, 0, 1, 1], [], []>} : vector<128x8xf32>, vector<8x128xf32>, vector<128x128xf32> -> vector<128x128xf32>
    %cst_28 = arith.constant 0.00999999977 : f32
    %36 = vector.broadcast %cst_28 : f32 to vector<128x128xf32>
    %37 = arith.mulf %36, %35 : vector<128x128xf32>
    %38 = arith.maximumf %35, %37 : vector<128x128xf32>
    %c0_29 = arith.constant 0 : index
    %c512_30 = arith.constant 512 : index
    %39 = vector.load %arg3[%c0_29, %c512_30] : memref<8x1664xf32, #tpu.memory_space<vmem>>, vector<8x128xf32>
    %cst_31 = arith.constant dense<0.000000e+00> : vector<8x128xf32>
    %40 = tpu.matmul %39, %38, %cst_31 {dimension_numbers = #tpu.dot_dimension_numbers<[1], [1], [0], [0], [0, 0, 1, 0], [], []>} : vector<8x128xf32>, vector<128x128xf32>, vector<8x128xf32> -> vector<8x128xf32>
    %41 = arith.addf %33, %40 : vector<8x128xf32>
    %c0_32 = arith.constant 0 : index
    %c640 = arith.constant 640 : index
    %42 = vector.load %arg2[%c0_32, %c640] : memref<8x1664xf32, #tpu.memory_space<vmem>>, vector<8x128xf32>
    %cst_33 = arith.constant dense<0.000000e+00> : vector<128x128xf32>
    %43 = tpu.matmul %0, %42, %cst_33 {dimension_numbers = #tpu.dot_dimension_numbers<[1], [0], [0], [1], [0, 0, 1, 1], [], []>} : vector<128x8xf32>, vector<8x128xf32>, vector<128x128xf32> -> vector<128x128xf32>
    %cst_34 = arith.constant 0.00999999977 : f32
    %44 = vector.broadcast %cst_34 : f32 to vector<128x128xf32>
    %45 = arith.mulf %44, %43 : vector<128x128xf32>
    %46 = arith.maximumf %43, %45 : vector<128x128xf32>
    %c0_35 = arith.constant 0 : index
    %c640_36 = arith.constant 640 : index
    %47 = vector.load %arg3[%c0_35, %c640_36] : memref<8x1664xf32, #tpu.memory_space<vmem>>, vector<8x128xf32>
    %cst_37 = arith.constant dense<0.000000e+00> : vector<8x128xf32>
    %48 = tpu.matmul %47, %46, %cst_37 {dimension_numbers = #tpu.dot_dimension_numbers<[1], [1], [0], [0], [0, 0, 1, 0], [], []>} : vector<8x128xf32>, vector<128x128xf32>, vector<8x128xf32> -> vector<8x128xf32>
    %49 = arith.addf %41, %48 : vector<8x128xf32>
    %c0_38 = arith.constant 0 : index
    %c768 = arith.constant 768 : index
    %50 = vector.load %arg2[%c0_38, %c768] : memref<8x1664xf32, #tpu.memory_space<vmem>>, vector<8x128xf32>
    %cst_39 = arith.constant dense<0.000000e+00> : vector<128x128xf32>
    %51 = tpu.matmul %0, %50, %cst_39 {dimension_numbers = #tpu.dot_dimension_numbers<[1], [0], [0], [1], [0, 0, 1, 1], [], []>} : vector<128x8xf32>, vector<8x128xf32>, vector<128x128xf32> -> vector<128x128xf32>
    %cst_40 = arith.constant 0.00999999977 : f32
    %52 = vector.broadcast %cst_40 : f32 to vector<128x128xf32>
    %53 = arith.mulf %52, %51 : vector<128x128xf32>
    %54 = arith.maximumf %51, %53 : vector<128x128xf32>
    %c0_41 = arith.constant 0 : index
    %c768_42 = arith.constant 768 : index
    %55 = vector.load %arg3[%c0_41, %c768_42] : memref<8x1664xf32, #tpu.memory_space<vmem>>, vector<8x128xf32>
    %cst_43 = arith.constant dense<0.000000e+00> : vector<8x128xf32>
    %56 = tpu.matmul %55, %54, %cst_43 {dimension_numbers = #tpu.dot_dimension_numbers<[1], [1], [0], [0], [0, 0, 1, 0], [], []>} : vector<8x128xf32>, vector<128x128xf32>, vector<8x128xf32> -> vector<8x128xf32>
    %57 = arith.addf %49, %56 : vector<8x128xf32>
    %c0_44 = arith.constant 0 : index
    %c896 = arith.constant 896 : index
    %58 = vector.load %arg2[%c0_44, %c896] : memref<8x1664xf32, #tpu.memory_space<vmem>>, vector<8x128xf32>
    %cst_45 = arith.constant dense<0.000000e+00> : vector<128x128xf32>
    %59 = tpu.matmul %0, %58, %cst_45 {dimension_numbers = #tpu.dot_dimension_numbers<[1], [0], [0], [1], [0, 0, 1, 1], [], []>} : vector<128x8xf32>, vector<8x128xf32>, vector<128x128xf32> -> vector<128x128xf32>
    %cst_46 = arith.constant 0.00999999977 : f32
    %60 = vector.broadcast %cst_46 : f32 to vector<128x128xf32>
    %61 = arith.mulf %60, %59 : vector<128x128xf32>
    %62 = arith.maximumf %59, %61 : vector<128x128xf32>
    %c0_47 = arith.constant 0 : index
    %c896_48 = arith.constant 896 : index
    %63 = vector.load %arg3[%c0_47, %c896_48] : memref<8x1664xf32, #tpu.memory_space<vmem>>, vector<8x128xf32>
    %cst_49 = arith.constant dense<0.000000e+00> : vector<8x128xf32>
    %64 = tpu.matmul %63, %62, %cst_49 {dimension_numbers = #tpu.dot_dimension_numbers<[1], [1], [0], [0], [0, 0, 1, 0], [], []>} : vector<8x128xf32>, vector<128x128xf32>, vector<8x128xf32> -> vector<8x128xf32>
    %65 = arith.addf %57, %64 : vector<8x128xf32>
    %c0_50 = arith.constant 0 : index
    %c1024 = arith.constant 1024 : index
    %66 = vector.load %arg2[%c0_50, %c1024] : memref<8x1664xf32, #tpu.memory_space<vmem>>, vector<8x128xf32>
    %cst_51 = arith.constant dense<0.000000e+00> : vector<128x128xf32>
    %67 = tpu.matmul %0, %66, %cst_51 {dimension_numbers = #tpu.dot_dimension_numbers<[1], [0], [0], [1], [0, 0, 1, 1], [], []>} : vector<128x8xf32>, vector<8x128xf32>, vector<128x128xf32> -> vector<128x128xf32>
    %cst_52 = arith.constant 0.00999999977 : f32
    %68 = vector.broadcast %cst_52 : f32 to vector<128x128xf32>
    %69 = arith.mulf %68, %67 : vector<128x128xf32>
    %70 = arith.maximumf %67, %69 : vector<128x128xf32>
    %c0_53 = arith.constant 0 : index
    %c1024_54 = arith.constant 1024 : index
    %71 = vector.load %arg3[%c0_53, %c1024_54] : memref<8x1664xf32, #tpu.memory_space<vmem>>, vector<8x128xf32>
    %cst_55 = arith.constant dense<0.000000e+00> : vector<8x128xf32>
    %72 = tpu.matmul %71, %70, %cst_55 {dimension_numbers = #tpu.dot_dimension_numbers<[1], [1], [0], [0], [0, 0, 1, 0], [], []>} : vector<8x128xf32>, vector<128x128xf32>, vector<8x128xf32> -> vector<8x128xf32>
    %73 = arith.addf %65, %72 : vector<8x128xf32>
    %c0_56 = arith.constant 0 : index
    %c1152 = arith.constant 1152 : index
    %74 = vector.load %arg2[%c0_56, %c1152] : memref<8x1664xf32, #tpu.memory_space<vmem>>, vector<8x128xf32>
    %cst_57 = arith.constant dense<0.000000e+00> : vector<128x128xf32>
    %75 = tpu.matmul %0, %74, %cst_57 {dimension_numbers = #tpu.dot_dimension_numbers<[1], [0], [0], [1], [0, 0, 1, 1], [], []>} : vector<128x8xf32>, vector<8x128xf32>, vector<128x128xf32> -> vector<128x128xf32>
    %cst_58 = arith.constant 0.00999999977 : f32
    %76 = vector.broadcast %cst_58 : f32 to vector<128x128xf32>
    %77 = arith.mulf %76, %75 : vector<128x128xf32>
    %78 = arith.maximumf %75, %77 : vector<128x128xf32>
    %c0_59 = arith.constant 0 : index
    %c1152_60 = arith.constant 1152 : index
    %79 = vector.load %arg3[%c0_59, %c1152_60] : memref<8x1664xf32, #tpu.memory_space<vmem>>, vector<8x128xf32>
    %cst_61 = arith.constant dense<0.000000e+00> : vector<8x128xf32>
    %80 = tpu.matmul %79, %78, %cst_61 {dimension_numbers = #tpu.dot_dimension_numbers<[1], [1], [0], [0], [0, 0, 1, 0], [], []>} : vector<8x128xf32>, vector<128x128xf32>, vector<8x128xf32> -> vector<8x128xf32>
    %81 = arith.addf %73, %80 : vector<8x128xf32>
    %c0_62 = arith.constant 0 : index
    %c1280 = arith.constant 1280 : index
    %82 = vector.load %arg2[%c0_62, %c1280] : memref<8x1664xf32, #tpu.memory_space<vmem>>, vector<8x128xf32>
    %cst_63 = arith.constant dense<0.000000e+00> : vector<128x128xf32>
    %83 = tpu.matmul %0, %82, %cst_63 {dimension_numbers = #tpu.dot_dimension_numbers<[1], [0], [0], [1], [0, 0, 1, 1], [], []>} : vector<128x8xf32>, vector<8x128xf32>, vector<128x128xf32> -> vector<128x128xf32>
    %cst_64 = arith.constant 0.00999999977 : f32
    %84 = vector.broadcast %cst_64 : f32 to vector<128x128xf32>
    %85 = arith.mulf %84, %83 : vector<128x128xf32>
    %86 = arith.maximumf %83, %85 : vector<128x128xf32>
    %c0_65 = arith.constant 0 : index
    %c1280_66 = arith.constant 1280 : index
    %87 = vector.load %arg3[%c0_65, %c1280_66] : memref<8x1664xf32, #tpu.memory_space<vmem>>, vector<8x128xf32>
    %cst_67 = arith.constant dense<0.000000e+00> : vector<8x128xf32>
    %88 = tpu.matmul %87, %86, %cst_67 {dimension_numbers = #tpu.dot_dimension_numbers<[1], [1], [0], [0], [0, 0, 1, 0], [], []>} : vector<8x128xf32>, vector<128x128xf32>, vector<8x128xf32> -> vector<8x128xf32>
    %89 = arith.addf %81, %88 : vector<8x128xf32>
    %c0_68 = arith.constant 0 : index
    %c1408 = arith.constant 1408 : index
    %90 = vector.load %arg2[%c0_68, %c1408] : memref<8x1664xf32, #tpu.memory_space<vmem>>, vector<8x128xf32>
    %cst_69 = arith.constant dense<0.000000e+00> : vector<128x128xf32>
    %91 = tpu.matmul %0, %90, %cst_69 {dimension_numbers = #tpu.dot_dimension_numbers<[1], [0], [0], [1], [0, 0, 1, 1], [], []>} : vector<128x8xf32>, vector<8x128xf32>, vector<128x128xf32> -> vector<128x128xf32>
    %cst_70 = arith.constant 0.00999999977 : f32
    %92 = vector.broadcast %cst_70 : f32 to vector<128x128xf32>
    %93 = arith.mulf %92, %91 : vector<128x128xf32>
    %94 = arith.maximumf %91, %93 : vector<128x128xf32>
    %c0_71 = arith.constant 0 : index
    %c1408_72 = arith.constant 1408 : index
    %95 = vector.load %arg3[%c0_71, %c1408_72] : memref<8x1664xf32, #tpu.memory_space<vmem>>, vector<8x128xf32>
    %cst_73 = arith.constant dense<0.000000e+00> : vector<8x128xf32>
    %96 = tpu.matmul %95, %94, %cst_73 {dimension_numbers = #tpu.dot_dimension_numbers<[1], [1], [0], [0], [0, 0, 1, 0], [], []>} : vector<8x128xf32>, vector<128x128xf32>, vector<8x128xf32> -> vector<8x128xf32>
    %97 = arith.addf %89, %96 : vector<8x128xf32>
    %c0_74 = arith.constant 0 : index
    %c1536 = arith.constant 1536 : index
    %98 = vector.load %arg2[%c0_74, %c1536] : memref<8x1664xf32, #tpu.memory_space<vmem>>, vector<8x128xf32>
    %cst_75 = arith.constant dense<0.000000e+00> : vector<128x128xf32>
    %99 = tpu.matmul %0, %98, %cst_75 {dimension_numbers = #tpu.dot_dimension_numbers<[1], [0], [0], [1], [0, 0, 1, 1], [], []>} : vector<128x8xf32>, vector<8x128xf32>, vector<128x128xf32> -> vector<128x128xf32>
    %cst_76 = arith.constant 0.00999999977 : f32
    %100 = vector.broadcast %cst_76 : f32 to vector<128x128xf32>
    %101 = arith.mulf %100, %99 : vector<128x128xf32>
    %102 = arith.maximumf %99, %101 : vector<128x128xf32>
    %c0_77 = arith.constant 0 : index
    %c1536_78 = arith.constant 1536 : index
    %103 = vector.load %arg3[%c0_77, %c1536_78] : memref<8x1664xf32, #tpu.memory_space<vmem>>, vector<8x128xf32>
    %cst_79 = arith.constant dense<0.000000e+00> : vector<8x128xf32>
    %104 = tpu.matmul %103, %102, %cst_79 {dimension_numbers = #tpu.dot_dimension_numbers<[1], [1], [0], [0], [0, 0, 1, 0], [], []>} : vector<8x128xf32>, vector<128x128xf32>, vector<8x128xf32> -> vector<8x128xf32>
    %105 = arith.addf %97, %104 : vector<8x128xf32>
    %c0_80 = arith.constant 0 : index
    %c0_81 = arith.constant 0 : index
    %106 = vector.load %arg4[%c0_80, %c0_81] : memref<8x1xf32, #tpu.memory_space<vmem>>, vector<8x1xf32>
    %107 = vector.broadcast %106 : vector<8x1xf32> to vector<8x128xf32>
    %108 = arith.addf %105, %107 : vector<8x128xf32>
    %c0_82 = arith.constant 0 : index
    %c0_83 = arith.constant 0 : index
    %109 = vector.load %arg5[%c0_82, %c0_83] : memref<8x128xf32, #tpu.memory_space<vmem>>, vector<8x128xf32>
    tpu.vector_store %arg5[%c0_82, %c0_83], %108 {strides = array<i32>} : memref<8x128xf32, #tpu.memory_space<vmem>>, vector<8x128xf32>,
    return
  }
  func.func @transform_0(%arg0: i32) -> (i32, i32) {
    %c0_i32 = arith.constant 0 : i32
    %c0_i32_0 = arith.constant 0 : i32
    return %arg0, %c0_i32 : i32, i32
  }
  func.func @transform_1(%arg0: i32) -> (i32, i32) {
    %c0_i32 = arith.constant 0 : i32
    %c0_i32_0 = arith.constant 0 : i32
    %c0_i32_1 = arith.constant 0 : i32
    return %c0_i32, %c0_i32_0 : i32, i32
  }
  func.func @transform_2(%arg0: i32) -> (i32, i32) {
    %c0_i32 = arith.constant 0 : i32
    %c0_i32_0 = arith.constant 0 : i32
    %c0_i32_1 = arith.constant 0 : i32
    return %c0_i32, %c0_i32_0 : i32, i32
  }
  func.func @transform_3(%arg0: i32) -> (i32, i32) {
    %c0_i32 = arith.constant 0 : i32
    %c0_i32_0 = arith.constant 0 : i32
    %c0_i32_1 = arith.constant 0 : i32
    return %c0_i32, %c0_i32_0 : i32, i32
  }
  func.func @transform_4(%arg0: i32) -> (i32, i32) {
    %c0_i32 = arith.constant 0 : i32
    %c0_i32_0 = arith.constant 0 : i32
    return %c0_i32, %arg0 : i32, i32
  }
}

</mosaic_0001>

<bundles_post_ra>
// kernel: tpu_custom_call.1
= control target key start
LH: loop header
LB: loop body
LE: loop exit
PB: predicated region body
PF: predicated region fallthrough
CT: control target
= control target key end

     0   :  { %9 = vsyncpa [#allocation3], 0  ;;  %s2971_s0 = inlined_call_operand.vmem [shape: f32[128,8], index: 0, kind: input, shape index: {}]   ;;  %s2972_s1 = inlined_call_operand.vmem [shape: f32[8,1664], index: 1, kind: input, shape index: {}]   ;;  %s2973_s2 = inlined_call_operand.hbm [shape: f32[8,1664], index: 2, kind: input, shape index: {}]   ;;  %s2974_s3 = inlined_call_operand.vmem [shape: f32[8,1], index: 3, kind: input, shape index: {}]   ;;  %s2975_s4 = inlined_call_operand.hbm [shape: f32[8,128], index: 4, kind: output, shape index: {}]  }
   0x1   :  { %10 = vsyncpa [#allocation4], 0  ;;  %s20_s17 = sshll.u32 %s2973_s2, 4  ;;  %s1962_s18 = smov [#allocation2]   ;;  %s21_s17 = int_to_ptr.hbm [resolvable:$true] %s20_s17 }
   0x2   :  { %s22_s19 = sshll.u32 %s1962_s18, 4  ;;  %s23_s19 = int_to_ptr.vmem [resolvable:$true] %s22_s19 }
   0x3   :  { %25 = dma.hbm_to_vmem [thread:$0]  %s21_s17, 1664, %s23_s19, [#allocation3]  }
   0x4   :  { %1958 = dma.done.wait [#allocation3], 1664  }
   0x5   :  { %1959 = vsyncadd [#allocation3], 4294965632  ;;  %vm49_vm0 = vcmask 64512   ;;  %v48_v0 = vld [vmem:[%s2972_s1] sm:$0xff]  ;;  %v196_v1 = vld [vmem:[%s2972_s1 + $0x8] sm:$0xff]  ;;  %s1670_s5 = sshll.u32 %s2975_s4, 4  ;;  %s1671_s5 = int_to_ptr.hbm [resolvable:$true] %s1670_s5 }
   0x6   :  { %v2002_v2 = vld [vmem:[%s2971_s0] sm:$0xff]  ;;  %113 = vmatpush.msra.mxu0 %v48_v0  ;;  %212 = vmatpush.msra.mxu1 %v196_v1  ;;  %v2011_v3 = vld [vmem:[%s2971_s0 + $0x8] sm:$0xff]  ;;  %v2020_v4 = vld [vmem:[%s2971_s0 + $0x10] sm:$0xff] }
   0x7   :  { %1680 = vmatmul.msk.f32.vlgmr.msra.gmra.mxu0 %vm49_vm0, %v2002_v2  ;;  %1696 = vmatmul.msk.f32.vlgmr.msra.gmra.mxu1 %vm49_vm0, %v2002_v2  ;;  %v2029_v5 = vld [vmem:[%s2971_s0 + $0x18] sm:$0xff]  ;;  %v2038_v6 = vld [vmem:[%s2971_s0 + $0x20] sm:$0xff]  ;;  %v2047_v7 = vld [vmem:[%s2971_s0 + $0x28] sm:$0xff] }
   0x8   :  { %v2056_v8 = vld [vmem:[%s2971_s0 + $0x30] sm:$0xff]  ;;  %v2065_v9 = vld [vmem:[%s2971_s0 + $0x38] sm:$0xff]  ;;  %v2074_v10 = vld [vmem:[%s2971_s0 + $0x40] sm:$0xff] }
   0x9   :  { %v2083_v11 = vld [vmem:[%s2971_s0 + $0x48] sm:$0xff]  ;;  %v2092_v12 = vld [vmem:[%s2971_s0 + $0x50] sm:$0xff]  ;;  %v2101_v13 = vld [vmem:[%s2971_s0 + $0x58] sm:$0xff] }
   0xa   :  { %v2110_v14 = vld [vmem:[%s2971_s0 + $0x60] sm:$0xff]  ;;  %v2119_v15 = vld [vmem:[%s2971_s0 + $0x68] sm:$0xff]  ;;  %v2128_v16 = vld [vmem:[%s2971_s0 + $0x70] sm:$0xff] }
   0xb   :  { %v2137_v17 = vld [vmem:[%s2971_s0 + $0x78] sm:$0xff] }
   0xc   :  { %2978 = vst [vmem:[#allocation8_spill] sm:$0xff] %v2137_v17 }
   0xf   :  { %1681 = vmatmul.msk.f32.gmra.mxu0 %vm49_vm0, %v2011_v3  ;;  %1697 = vmatmul.msk.f32.gmra.mxu1 %vm49_vm0, %v2011_v3 }
  0x17   :  { %1682 = vmatmul.msk.f32.gmra.mxu0 %vm49_vm0, %v2020_v4  ;;  %1698 = vmatmul.msk.f32.gmra.mxu1 %vm49_vm0, %v2020_v4 }
  0x1f   :  { %1683 = vmatmul.msk.f32.gmra.mxu0 %vm49_vm0, %v2029_v5  ;;  %1699 = vmatmul.msk.f32.gmra.mxu1 %vm49_vm0, %v2029_v5 }
  0x27   :  { %1684 = vmatmul.msk.f32.gmra.mxu0 %vm49_vm0, %v2038_v6  ;;  %1700 = vmatmul.msk.f32.gmra.mxu1 %vm49_vm0, %v2038_v6 }
  0x2f   :  { %1685 = vmatmul.msk.f32.gmra.mxu0 %vm49_vm0, %v2047_v7  ;;  %1701 = vmatmul.msk.f32.gmra.mxu1 %vm49_vm0, %v2047_v7 }
  0x37   :  { %1686 = vmatmul.msk.f32.gmra.mxu0 %vm49_vm0, %v2056_v8  ;;  %1702 = vmatmul.msk.f32.gmra.mxu1 %vm49_vm0, %v2056_v8 }
  0x3f   :  { %1687 = vmatmul.msk.f32.gmra.mxu0 %vm49_vm0, %v2065_v9  ;;  %1703 = vmatmul.msk.f32.gmra.mxu1 %vm49_vm0, %v2065_v9 }
  0x47   :  { %1688 = vmatmul.msk.f32.gmra.mxu0 %vm49_vm0, %v2074_v10  ;;  %1704 = vmatmul.msk.f32.gmra.mxu1 %vm49_vm0, %v2074_v10 }
  0x4f   :  { %1689 = vmatmul.msk.f32.gmra.mxu0 %vm49_vm0, %v2083_v11  ;;  %1705 = vmatmul.msk.f32.gmra.mxu1 %vm49_vm0, %v2083_v11 }
  0x57   :  { %1690 = vmatmul.msk.f32.gmra.mxu0 %vm49_vm0, %v2092_v12  ;;  %1706 = vmatmul.msk.f32.gmra.mxu1 %vm49_vm0, %v2092_v12 }
  0x5f   :  { %1691 = vmatmul.msk.f32.gmra.mxu0 %vm49_vm0, %v2101_v13  ;;  %1707 = vmatmul.msk.f32.gmra.mxu1 %vm49_vm0, %v2101_v13 }
  0x67   :  { %1692 = vmatmul.msk.f32.gmra.mxu0 %vm49_vm0, %v2110_v14  ;;  %1708 = vmatmul.msk.f32.gmra.mxu1 %vm49_vm0, %v2110_v14 }
  0x6f   :  { %1693 = vmatmul.msk.f32.gmra.mxu0 %vm49_vm0, %v2119_v15  ;;  %1709 = vmatmul.msk.f32.gmra.mxu1 %vm49_vm0, %v2119_v15 }
  0x77   :  { %1694 = vmatmul.msk.f32.gmra.mxu0 %vm49_vm0, %v2128_v16  ;;  %1710 = vmatmul.msk.f32.gmra.mxu1 %vm49_vm0, %v2128_v16 }
  0x7f   :  { %1695 = vmatmul.msk.f32.gmra.mxu0 %vm49_vm0, %v2137_v17  ;;  %1711 = vmatmul.msk.f32.gmra.mxu1 %vm49_vm0, %v2137_v17 }
  0x84   :  { %v2143_v18 = vpop.f32.mrf.mxu0  ;;  %v2145_v19 = vpop.f32.mrf.mxu1 }
  0x8c   :  { %v2147_v20 = vpop.f32.mrf.mxu0  ;;  %v2149_v21 = vpop.f32.mrf.mxu1 }
  0x94   :  { %v2151_v22 = vpop.f32.mrf.mxu0  ;;  %v2153_v23 = vpop.f32.mrf.mxu1 }
  0x9c   :  { %v2155_v24 = vpop.f32.mrf.mxu0  ;;  %v2157_v25 = vpop.f32.mrf.mxu1 }
  0xa4   :  { %v2159_v26 = vpop.f32.mrf.mxu0  ;;  %v2161_v27 = vpop.f32.mrf.mxu1 }
  0xac   :  { %v2163_v28 = vpop.f32.mrf.mxu0  ;;  %v2165_v29 = vpop.f32.mrf.mxu1 }
  0xb4   :  { %v2167_v30 = vpop.f32.mrf.mxu0  ;;  %v2169_v31 = vpop.f32.mrf.mxu1 }
  0xbc   :  { %v2171_v32 = vpop.f32.mrf.mxu0  ;;  %v2173_v33 = vpop.f32.mrf.mxu1 }
  0xc4   :  { %v2175_v34 = vpop.f32.mrf.mxu0  ;;  %v2177_v35 = vpop.f32.mrf.mxu1 }
  0xcc   :  { %v142_v36 = vpop.f32.mrf.mxu0  ;;  %v241_v37 = vpop.f32.mrf.mxu1 }
  0xd4   :  { %v145_v38 = vpop.f32.mrf.mxu0  ;;  %v244_v39 = vpop.f32.mrf.mxu1 }
  0xdc   :  { %v148_v40 = vpop.f32.mrf.mxu0  ;;  %v247_v41 = vpop.f32.mrf.mxu1 }
  0xdd   :  { %v273_v1 = vmul.f32 0.01, %v247_v41 }
  0xe4   :  { %v151_v42 = vpop.f32.mrf.mxu0  ;;  %v250_v43 = vpop.f32.mrf.mxu1 }
  0xe5   :  { %v274_v61 = vmul.f32 0.01, %v250_v43  ;;  %v175_v63 = vmul.f32 0.01, %v151_v42 }
  0xe7   :  { %v290_v0 = vmax.f32 %v250_v43, %v274_v61  ;;  %v191_v17 = vmax.f32 %v151_v42, %v175_v63  ;;  %v271_v43 = vmul.f32 0.01, %v241_v37  ;;  %v264_v63 = vmul.f32 0.01, %v2153_v23 }
  0xec   :  { %v154_v44 = vpop.f32.mrf.mxu0  ;;  %v253_v45 = vpop.f32.mrf.mxu1 }
  0xed   :  { %v275_v57 = vmul.f32 0.01, %v253_v45  ;;  %v176_v59 = vmul.f32 0.01, %v154_v44 }
  0xef   :  { %v291_v60 = vmax.f32 %v253_v45, %v275_v57  ;;  %v192_v62 = vmax.f32 %v154_v44, %v176_v59  ;;  %v173_v44 = vmul.f32 0.01, %v145_v38 }
  0xf4   :  { %v157_v46 = vpop.f32.mrf.mxu0  ;;  %v256_v47 = vpop.f32.mrf.mxu1 }
  0xf5   :  { %v276_v52 = vmul.f32 0.01, %v256_v47  ;;  %v177_v55 = vmul.f32 0.01, %v157_v46 }
  0xf7   :  { %v292_v56 = vmax.f32 %v256_v47, %v276_v52  ;;  %v193_v58 = vmax.f32 %v157_v46, %v177_v55  ;;  %v2182_v46 = vld [vmem:[%s2972_s1 + $0x18] sm:$0xff]  ;;  %v189_v47 = vmax.f32 %v145_v38, %v173_v44 }
  0xf8   :  { %471 = vmatpush.msrb.mxu0 %v2182_v46 }
  0xf9   :  { %1728 = vmatmul.msk.f32.vlgmr.msrb.gmra.mxu0 %vm49_vm0, %v2002_v2 }
  0xfc   :  { %v160_v48 = vpop.f32.mrf.mxu0  ;;  %v259_v49 = vpop.f32.mrf.mxu1 }
  0xfd   :  { %v277_v50 = vmul.f32 0.01, %v259_v49  ;;  %v178_v51 = vmul.f32 0.01, %v160_v48 }
  0xff   :  { %v293_v53 = vmax.f32 %v259_v49, %v277_v50  ;;  %v194_v54 = vmax.f32 %v160_v48, %v178_v51  ;;  %v174_v49 = vmul.f32 0.01, %v148_v40  ;;  %v289_v48 = vmax.f32 %v247_v41, %v273_v1 }
 0x100   :  { %v272_v50 = vmul.f32 0.01, %v244_v39  ;;  %v287_v41 = vmax.f32 %v241_v37, %v271_v43  ;;  %v270_v51 = vmul.f32 0.01, %v2177_v35  ;;  %v263_v1 = vmul.f32 0.01, %v2149_v21 }
 0x101   :  { %295 = vmatpush.xpose.msra.mxu2 %v293_v53  ;;  %315 = vmatpush.xpose.msra.mxu3 %v194_v54  ;;  %v190_v45 = vmax.f32 %v148_v40, %v174_v49  ;;  %v171_v53 = vmul.f32 0.01, %v2175_v34  ;;  %v170_v54 = vmul.f32 0.01, %v2171_v32  ;;  %v164_v49 = vmul.f32 0.01, %v2147_v20 }
 0x102   :  { %v288_v42 = vmax.f32 %v244_v39, %v272_v50  ;;  %1729 = vmatmul.msk.f32.gmra.mxu0 %vm49_vm0, %v2011_v3  ;;  %v286_v40 = vmax.f32 %v2177_v35, %v270_v51  ;;  %v269_v39 = vmul.f32 0.01, %v2173_v33  ;;  %v163_v50 = vmul.f32 0.01, %v2143_v18 }
 0x103   :  { %v187_v38 = vmax.f32 %v2175_v34, %v171_v53  ;;  %v186_v55 = vmax.f32 %v2171_v32, %v170_v54  ;;  %v267_v34 = vmul.f32 0.01, %v2165_v29  ;;  %v266_v32 = vmul.f32 0.01, %v2161_v27 }
 0x104   :  { %v285_v37 = vmax.f32 %v2173_v33, %v269_v39 }
 0x105   :  { %296 = vmatpush.xpose.msra.mxu2 %v292_v56  ;;  %316 = vmatpush.xpose.msra.mxu3 %v193_v58  ;;  %v169_v56 = vmul.f32 0.01, %v2167_v30  ;;  %v168_v58 = vmul.f32 0.01, %v2163_v28  ;;  %v283_v33 = vmax.f32 %v2165_v29, %v267_v34 }
 0x107   :  { %v185_v57 = vmax.f32 %v2167_v30, %v169_v56  ;;  %v184_v59 = vmax.f32 %v2163_v28, %v168_v58  ;;  %v265_v30 = vmul.f32 0.01, %v2157_v25 }
 0x109   :  { %297 = vmatpush.xpose.msra.mxu2 %v291_v60  ;;  %317 = vmatpush.xpose.msra.mxu3 %v192_v62  ;;  %v167_v60 = vmul.f32 0.01, %v2159_v26  ;;  %v166_v62 = vmul.f32 0.01, %v2155_v24  ;;  %v281_v29 = vmax.f32 %v2157_v25, %v265_v30  ;;  %v180_v25 = vmax.f32 %v2147_v20, %v164_v49  ;;  %v294_v20 = vld [vmem:[#allocation2 + $0x8] sm:$0xff] }
 0x10a   :  { %1730 = vmatmul.msk.f32.gmra.mxu0 %vm49_vm0, %v2020_v4 }
 0x10b   :  { %v183_v61 = vmax.f32 %v2159_v26, %v167_v60  ;;  %v182_v28 = vmax.f32 %v2155_v24, %v166_v62  ;;  %v279_v24 = vmax.f32 %v2149_v21, %v263_v1  ;;  %v195_v21 = vld [vmem:[#allocation2] sm:$0xff] }
 0x10d   :  { %298 = vmatpush.xpose.msra.mxu2 %v290_v0  ;;  %318 = vmatpush.xpose.msra.mxu3 %v191_v17  ;;  %v172_v17 = vmul.f32 0.01, %v142_v36  ;;  %v165_v0 = vmul.f32 0.01, %v2151_v22 }
 0x10f   :  { %v188_v52 = vmax.f32 %v142_v36, %v172_v17  ;;  %v268_v36 = vmul.f32 0.01, %v2169_v31  ;;  %v181_v26 = vmax.f32 %v2151_v22, %v165_v0 }
 0x111   :  { %299 = vmatpush.xpose.msra.mxu2 %v289_v48  ;;  %319 = vmatpush.xpose.msra.mxu3 %v190_v45  ;;  %v284_v35 = vmax.f32 %v2169_v31, %v268_v36  ;;  %v282_v31 = vmax.f32 %v2161_v27, %v266_v32  ;;  %v280_v27 = vmax.f32 %v2153_v23, %v264_v63  ;;  %v262_v48 = vmul.f32 0.01, %v2145_v19  ;;  %v335_v45 = vld [vmem:[%s2972_s1 + $0x10] sm:$0xff] }
 0x112   :  { %1731 = vmatmul.msk.f32.gmra.mxu0 %vm49_vm0, %v2029_v5  ;;  %v179_v23 = vmax.f32 %v2143_v18, %v163_v50  ;;  %v2979_v18 = vld [vmem:[#allocation8_spill] sm:$0xff] }
 0x113   :  { %v278_v22 = vmax.f32 %v2145_v19, %v262_v48  ;;  %v2286_v19 = vld [vmem:[%s2972_s1 + $0x20] sm:$0xff] }
 0x115   :  { %300 = vmatpush.xpose.msra.mxu2 %v288_v42  ;;  %320 = vmatpush.xpose.msra.mxu3 %v189_v47 }
 0x119   :  { %301 = vmatpush.xpose.msra.mxu2 %v287_v41  ;;  %321 = vmatpush.xpose.msra.mxu3 %v188_v52 }
 0x11a   :  { %1732 = vmatmul.msk.f32.gmra.mxu0 %vm49_vm0, %v2038_v6 }
 0x11d   :  { %302 = vmatpush.xpose.msra.mxu2 %v286_v40  ;;  %322 = vmatpush.xpose.msra.mxu3 %v187_v38 }
 0x121   :  { %303 = vmatpush.xpose.msra.mxu2 %v285_v37  ;;  %323 = vmatpush.xpose.msra.mxu3 %v186_v55 }
 0x122   :  { %1733 = vmatmul.msk.f32.gmra.mxu0 %vm49_vm0, %v2047_v7 }
 0x125   :  { %304 = vmatpush.xpose.msra.mxu2 %v284_v35  ;;  %324 = vmatpush.xpose.msra.mxu3 %v185_v57 }
 0x129   :  { %305 = vmatpush.xpose.msra.mxu2 %v283_v33  ;;  %325 = vmatpush.xpose.msra.mxu3 %v184_v59 }
 0x12a   :  { %1734 = vmatmul.msk.f32.gmra.mxu0 %vm49_vm0, %v2056_v8 }
 0x12d   :  { %306 = vmatpush.xpose.msra.mxu2 %v282_v31  ;;  %326 = vmatpush.xpose.msra.mxu3 %v183_v61 }
 0x131   :  { %307 = vmatpush.xpose.msra.mxu2 %v281_v29  ;;  %327 = vmatpush.xpose.msra.mxu3 %v182_v28 }
 0x132   :  { %1735 = vmatmul.msk.f32.gmra.mxu0 %vm49_vm0, %v2065_v9 }
 0x135   :  { %308 = vmatpush.xpose.msra.mxu2 %v280_v27  ;;  %328 = vmatpush.xpose.msra.mxu3 %v181_v26 }
 0x139   :  { %309 = vmatpush.xpose.msra.mxu2 %v279_v24  ;;  %329 = vmatpush.xpose.msra.mxu3 %v180_v25 }
 0x13d   :  { %310 = vmatpush.xpose.msra.mxu2 %v278_v22  ;;  %330 = vmatpush.xpose.msra.mxu3 %v179_v23 }
 0x140   :  { %311 = vmatmul.f32.vlgmr.msra.gmra.mxu2 %v294_v20  ;;  %331 = vmatmul.f32.vlgmr.msra.gmra.mxu3 %v195_v21 }
 0x141   :  { %351 = vmatpush.msrb.mxu2 %v335_v45  ;;  %1888 = vmatpush.msrb.mxu3 %v2182_v46 }
 0x143   :  { %1889 = vmatpush.msra.mxu3 %v2286_v19 }
 0x148   :  { %1712 = vmatmul.msk.f32.vlgmr.msrb.gmra.mxu2 %vm49_vm0, %v2002_v2  ;;  %1736 = vmatmul.msk.f32.vlgmr.msrb.gmra.mxu3 %vm49_vm0, %v2074_v10 }
 0x150   :  { %1713 = vmatmul.msk.f32.gmra.mxu2 %vm49_vm0, %v2011_v3  ;;  %1737 = vmatmul.msk.f32.gmra.mxu3 %vm49_vm0, %v2083_v11 }
 0x158   :  { %1714 = vmatmul.msk.f32.gmra.mxu2 %vm49_vm0, %v2020_v4  ;;  %1738 = vmatmul.msk.f32.gmra.mxu3 %vm49_vm0, %v2092_v12 }
 0x160   :  { %1715 = vmatmul.msk.f32.gmra.mxu2 %vm49_vm0, %v2029_v5  ;;  %1739 = vmatmul.msk.f32.gmra.mxu3 %vm49_vm0, %v2101_v13 }
 0x168   :  { %1716 = vmatmul.msk.f32.gmra.mxu2 %vm49_vm0, %v2038_v6  ;;  %1740 = vmatmul.msk.f32.gmra.mxu3 %vm49_vm0, %v2110_v14 }
 0x170   :  { %1717 = vmatmul.msk.f32.gmra.mxu2 %vm49_vm0, %v2047_v7  ;;  %1741 = vmatmul.msk.f32.gmra.mxu3 %vm49_vm0, %v2119_v15 }
 0x176   :  { %v2313_v41 = vpop.f32.mrf.mxu0 }
 0x178   :  { %1718 = vmatmul.msk.f32.gmra.mxu2 %vm49_vm0, %v2056_v8  ;;  %1742 = vmatmul.msk.f32.gmra.mxu3 %vm49_vm0, %v2128_v16 }
 0x17f   :  { %v2321_v53 = vpop.f32.mrf.mxu0 }
 0x180   :  { %1719 = vmatmul.msk.f32.gmra.mxu2 %vm49_vm0, %v2065_v9  ;;  %1743 = vmatmul.msk.f32.gmra.mxu3 %vm49_vm0, %v2979_v18 }
 0x187   :  { %v479_v37 = vpop.f32.mrf.mxu0 }
 0x188   :  { %1720 = vmatmul.msk.f32.gmra.mxu2 %vm49_vm0, %v2074_v10  ;;  %1752 = vmatmul.msk.f32.vlgmr.msra.gmra.mxu3 %vm49_vm0, %v2074_v10 }
 0x18f   :  { %v482_v56 = vpop.f32.mrf.mxu0 }
 0x190   :  { %1721 = vmatmul.msk.f32.gmra.mxu2 %vm49_vm0, %v2083_v11  ;;  %1753 = vmatmul.msk.f32.gmra.mxu3 %vm49_vm0, %v2083_v11 }
 0x197   :  { %v485_v57 = vpop.f32.mrf.mxu0 }
 0x198   :  { %1722 = vmatmul.msk.f32.gmra.mxu2 %vm49_vm0, %v2092_v12  ;;  %1754 = vmatmul.msk.f32.gmra.mxu3 %vm49_vm0, %v2092_v12 }
 0x19f   :  { %v488_v62 = vpop.f32.mrf.mxu0 }
 0x1a0   :  { %1723 = vmatmul.msk.f32.gmra.mxu2 %vm49_vm0, %v2101_v13  ;;  %1755 = vmatmul.msk.f32.gmra.mxu3 %vm49_vm0, %v2101_v13 }
 0x1a7   :  { %v491_v26 = vpop.f32.mrf.mxu0 }
 0x1a8   :  { %1724 = vmatmul.msk.f32.gmra.mxu2 %vm49_vm0, %v2110_v14  ;;  %1756 = vmatmul.msk.f32.gmra.mxu3 %vm49_vm0, %v2110_v14 }
 0x1af   :  { %v494_v23 = vpop.f32.mrf.mxu0 }
 0x1b0   :  { %1725 = vmatmul.msk.f32.gmra.mxu2 %vm49_vm0, %v2119_v15  ;;  %1757 = vmatmul.msk.f32.gmra.mxu3 %vm49_vm0, %v2119_v15  ;;  %v528_v20 = vmul.f32 0.01, %v494_v23 }
 0x1b8   :  { %1726 = vmatmul.msk.f32.gmra.mxu2 %vm49_vm0, %v2128_v16  ;;  %1758 = vmatmul.msk.f32.gmra.mxu3 %vm49_vm0, %v2128_v16 }
 0x1c0   :  { %1727 = vmatmul.msk.f32.gmra.mxu2 %vm49_vm0, %v2979_v18  ;;  %1759 = vmatmul.msk.f32.gmra.mxu3 %vm49_vm0, %v2979_v18 }
 0x1c3   :  { %v2301_v46 = vpop.f32.mrf.mxu2  ;;  %v2303_v44 = vpop.f32.mrf.mxu3 }
 0x1cb   :  { %v2307_v42 = vpop.f32.mrf.mxu2  ;;  %v497_v43 = vpop.f32.mrf.mxu3 }
 0x1cc   :  { %v529_v22 = vmul.f32 0.01, %v497_v43 }
 0x1ce   :  { %v545_v45 = vmax.f32 %v497_v43, %v529_v22 }
 0x1d3   :  { %v2311_v47 = vpop.f32.mrf.mxu2  ;;  %v500_v17 = vpop.f32.mrf.mxu3 }
 0x1d4   :  { %v530_v25 = vmul.f32 0.01, %v500_v17 }
 0x1d6   :  { %v546_v50 = vmax.f32 %v500_v17, %v530_v25 }
 0x1db   :  { %v2317_v51 = vpop.f32.mrf.mxu2  ;;  %v503_v52 = vpop.f32.mrf.mxu3 }
 0x1dc   :  { %v531_v49 = vmul.f32 0.01, %v503_v52 }
 0x1de   :  { %v547_v24 = vmax.f32 %v503_v52, %v531_v49 }
 0x1e3   :  { %v2323_v40 = vpop.f32.mrf.mxu2  ;;  %v506_v39 = vpop.f32.mrf.mxu3 }
 0x1e4   :  { %v532_v0 = vmul.f32 0.01, %v506_v39 }
 0x1e6   :  { %v548_v1 = vmax.f32 %v506_v39, %v532_v0  ;;  %v526_v39 = vmul.f32 0.01, %v488_v62 }
 0x1e8   :  { %v542_v52 = vmax.f32 %v488_v62, %v526_v39 }
 0x1eb   :  { %v2327_v38 = vpop.f32.mrf.mxu2  ;;  %v509_v54 = vpop.f32.mrf.mxu3 }
 0x1ec   :  { %v533_v28 = vmul.f32 0.01, %v509_v54 }
 0x1ee   :  { %v549_v63 = vmax.f32 %v509_v54, %v533_v28  ;;  %v544_v54 = vmax.f32 %v494_v23, %v528_v20  ;;  %v522_v28 = vmul.f32 0.01, %v2321_v53 }
 0x1f0   :  { %v538_v62 = vmax.f32 %v2321_v53, %v522_v28 }
 0x1f3   :  { %v2329_v36 = vpop.f32.mrf.mxu2  ;;  %v512_v55 = vpop.f32.mrf.mxu3 }
 0x1f4   :  { %v534_v30 = vmul.f32 0.01, %v512_v55 }
 0x1f6   :  { %v550_v29 = vmax.f32 %v512_v55, %v534_v30  ;;  %v527_v55 = vmul.f32 0.01, %v491_v26  ;;  %v523_v30 = vmul.f32 0.01, %v479_v37 }
 0x1fb   :  { %v2331_v35 = vpop.f32.mrf.mxu2  ;;  %v515_v34 = vpop.f32.mrf.mxu3 }
 0x1fc   :  { %v535_v60 = vmul.f32 0.01, %v515_v34 }
 0x1fe   :  { %v551_v31 = vmax.f32 %v515_v34, %v535_v60  ;;  %v543_v34 = vmax.f32 %v491_v26, %v527_v55  ;;  %v524_v60 = vmul.f32 0.01, %v482_v56  ;;  %v521_v26 = vmul.f32 0.01, %v2313_v41 }
 0x200   :  { %v540_v43 = vmax.f32 %v482_v56, %v524_v60  ;;  %v553_v56 = vld [vmem:[#allocation2 + $0x18] sm:$0xff]  ;;  %v407_v60 = vmul.f32 0.01, %v2331_v35 }
 0x203   :  { %v2333_v58 = vpop.f32.mrf.mxu2  ;;  %v518_v33 = vpop.f32.mrf.mxu3 }
 0x204   :  { %v536_v32 = vmul.f32 0.01, %v518_v33 }
 0x206   :  { %v552_v59 = vmax.f32 %v518_v33, %v536_v32  ;;  %v525_v32 = vmul.f32 0.01, %v485_v57 }
 0x208   :  { %554 = vmatpush.xpose.msrb.mxu1 %v552_v59  ;;  %v541_v59 = vmax.f32 %v485_v57, %v525_v32  ;;  %v537_v57 = vmax.f32 %v2313_v41, %v521_v26 }
 0x20b   :  { %v2335_v61 = vpop.f32.mrf.mxu2 }
 0x20c   :  { %555 = vmatpush.xpose.msrb.mxu1 %v551_v31  ;;  %v2341_v31 = vpop.f32.mrf.mxu3 }
 0x210   :  { %556 = vmatpush.xpose.msrb.mxu1 %v550_v29  ;;  %v539_v29 = vmax.f32 %v479_v37, %v523_v30  ;;  %v405_v30 = vmul.f32 0.01, %v2327_v38 }
 0x212   :  { %v421_v26 = vmax.f32 %v2327_v38, %v405_v30  ;;  %v402_v38 = vmul.f32 0.01, %v2311_v47 }
 0x213   :  { %v2337_v27 = vpop.f32.mrf.mxu2 }
 0x214   :  { %557 = vmatpush.xpose.msrb.mxu1 %v549_v63  ;;  %v2344_v0 = vpop.f32.mrf.mxu3 }
 0x218   :  { %558 = vmatpush.xpose.msrb.mxu1 %v548_v1 }
 0x21b   :  { %v2339_v48 = vpop.f32.mrf.mxu2 }
 0x21c   :  { %559 = vmatpush.xpose.msrb.mxu1 %v547_v24  ;;  %v2349_v25 = vpop.f32.mrf.mxu3 }
 0x220   :  { %560 = vmatpush.xpose.msrb.mxu1 %v546_v50 }
 0x223   :  { %v386_v21 = vpop.f32.mrf.mxu2 }
 0x224   :  { %561 = vmatpush.xpose.msrb.mxu1 %v545_v45  ;;  %v2352_v45 = vpop.f32.mrf.mxu3  ;;  %v412_v41 = vmul.f32 0.01, %v386_v21 }
 0x226   :  { %v428_v55 = vmax.f32 %v386_v21, %v412_v41  ;;  %v408_v21 = vmul.f32 0.01, %v2333_v58  ;;  %v650_v41 = vmul.f32 0.01, %v2344_v0 }
 0x228   :  { %562 = vmatpush.xpose.msrb.mxu1 %v544_v54  ;;  %v411_v54 = vmul.f32 0.01, %v2339_v48 }
 0x22a   :  { %v427_v39 = vmax.f32 %v2339_v48, %v411_v54  ;;  %v433_v54 = vld [vmem:[#allocation2 + $0x10] sm:$0xff] }
 0x22b   :  { %v389_v33 = vpop.f32.mrf.mxu2 }
 0x22c   :  { %563 = vmatpush.xpose.msrb.mxu1 %v543_v34  ;;  %v413_v53 = vmul.f32 0.01, %v389_v33  ;;  %v410_v34 = vmul.f32 0.01, %v2337_v27 }
 0x22e   :  { %v429_v20 = vmax.f32 %v389_v33, %v413_v53  ;;  %v426_v32 = vmax.f32 %v2337_v27, %v410_v34  ;;  %v406_v27 = vmul.f32 0.01, %v2329_v36  ;;  %v401_v53 = vmul.f32 0.01, %v2307_v42 }
 0x230   :  { %564 = vmatpush.xpose.msrb.mxu1 %v542_v52  ;;  %v409_v52 = vmul.f32 0.01, %v2335_v61 }
 0x233   :  { %v392_v17 = vpop.f32.mrf.mxu2 }
 0x234   :  { %565 = vmatpush.xpose.msrb.mxu1 %v541_v59  ;;  %v414_v50 = vmul.f32 0.01, %v392_v17  ;;  %v425_v59 = vmax.f32 %v2335_v61, %v409_v52 }
 0x236   :  { %v430_v23 = vmax.f32 %v392_v17, %v414_v50  ;;  %v424_v17 = vmax.f32 %v2333_v58, %v408_v21 }
 0x238   :  { %566 = vmatpush.xpose.msrb.mxu1 %v540_v43  ;;  %v423_v43 = vmax.f32 %v2331_v35, %v407_v60 }
 0x23b   :  { %v395_v63 = vpop.f32.mrf.mxu2 }
 0x23c   :  { %567 = vmatpush.xpose.msrb.mxu1 %v539_v29  ;;  %v415_v49 = vmul.f32 0.01, %v395_v63  ;;  %v422_v29 = vmax.f32 %v2329_v36, %v406_v27 }
 0x23e   :  { %v431_v22 = vmax.f32 %v395_v63, %v415_v49 }
 0x240   :  { %568 = vmatpush.xpose.msrb.mxu1 %v538_v62  ;;  %v404_v62 = vmul.f32 0.01, %v2323_v40 }
 0x243   :  { %v398_v1 = vpop.f32.mrf.mxu2 }
 0x244   :  { %v416_v24 = vmul.f32 0.01, %v398_v1  ;;  %569 = vmatpush.xpose.msrb.mxu1 %v537_v57 }
 0x246   :  { %v432_v37 = vmax.f32 %v398_v1, %v416_v24  ;;  %v420_v1 = vmax.f32 %v2323_v40, %v404_v62  ;;  %v403_v24 = vmul.f32 0.01, %v2317_v51  ;;  %v651_v40 = vmul.f32 0.01, %v2349_v25 }
 0x247   :  { %570 = vmatmul.f32.vlgmr.msrb.gmra.mxu1 %v553_v56  ;;  %v652_v56 = vmul.f32 0.01, %v2352_v45 }
 0x248   :  { %591 = vmatpush.msra.mxu1 %v2286_v19  ;;  %434 = vmatpush.xpose.msra.mxu2 %v432_v37  ;;  %v629_v19 = vpop.f32.mrf.mxu3  ;;  %v419_v50 = vmax.f32 %v2317_v51, %v403_v24  ;;  %v417_v51 = vmax.f32 %v2307_v42, %v401_v53  ;;  %v815_v24 = vld [vmem:[%s2972_s1 + $0x30] sm:$0xff] }
 0x249   :  { %v653_v36 = vmul.f32 0.01, %v629_v19 }
 0x24b   :  { %v669_v37 = vmax.f32 %v629_v19, %v653_v36 }
 0x24c   :  { %435 = vmatpush.xpose.msra.mxu2 %v431_v22  ;;  %v668_v22 = vmax.f32 %v2352_v45, %v652_v56  ;;  %v695_v45 = vld [vmem:[%s2972_s1 + $0x28] sm:$0xff]  ;;  %v673_v56 = vld [vmem:[#allocation2 + $0x20] sm:$0xff] }
 0x24f   :  { %1744 = vmatmul.msk.f32.vlgmr.msra.gmra.mxu1 %vm49_vm0, %v2002_v2 }
 0x250   :  { %436 = vmatpush.xpose.msra.mxu2 %v430_v23  ;;  %v632_v33 = vpop.f32.mrf.mxu3  ;;  %v418_v23 = vmax.f32 %v2311_v47, %v402_v38  ;;  %v666_v47 = vmax.f32 %v2344_v0, %v650_v41 }
 0x251   :  { %v654_v57 = vmul.f32 0.01, %v632_v33 }
 0x253   :  { %v670_v49 = vmax.f32 %v632_v33, %v654_v57 }
 0x254   :  { %437 = vmatpush.xpose.msra.mxu2 %v429_v20  ;;  %v667_v20 = vmax.f32 %v2349_v25, %v651_v40 }
 0x257   :  { %1745 = vmatmul.msk.f32.gmra.mxu1 %vm49_vm0, %v2011_v3 }
 0x258   :  { %438 = vmatpush.xpose.msra.mxu2 %v428_v55  ;;  %v635_v48 = vpop.f32.mrf.mxu3  ;;  %v649_v55 = vmul.f32 0.01, %v2341_v31 }
 0x259   :  { %v655_v28 = vmul.f32 0.01, %v635_v48 }
 0x25a   :  { %v665_v25 = vmax.f32 %v2341_v31, %v649_v55 }
 0x25b   :  { %v671_v35 = vmax.f32 %v635_v48, %v655_v28 }
 0x25c   :  { %439 = vmatpush.xpose.msra.mxu2 %v427_v39 }
 0x25f   :  { %1746 = vmatmul.msk.f32.gmra.mxu1 %vm49_vm0, %v2020_v4 }
 0x260   :  { %440 = vmatpush.xpose.msra.mxu2 %v426_v32  ;;  %v638_v61 = vpop.f32.mrf.mxu3 }
 0x261   :  { %v656_v63 = vmul.f32 0.01, %v638_v61 }
 0x263   :  { %v672_v58 = vmax.f32 %v638_v61, %v656_v63 }
 0x264   :  { %441 = vmatpush.xpose.msra.mxu2 %v425_v59 }
 0x265   :  { %674 = vmatpush.xpose.msrb.mxu1 %v672_v58 }
 0x267   :  { %1747 = vmatmul.msk.f32.gmra.mxu1 %vm49_vm0, %v2029_v5 }
 0x268   :  { %442 = vmatpush.xpose.msra.mxu2 %v424_v17 }
 0x269   :  { %675 = vmatpush.xpose.msrb.mxu1 %v671_v35 }
 0x26c   :  { %443 = vmatpush.xpose.msra.mxu2 %v423_v43 }
 0x26d   :  { %676 = vmatpush.xpose.msrb.mxu1 %v670_v49 }
 0x26f   :  { %1748 = vmatmul.msk.f32.gmra.mxu1 %vm49_vm0, %v2038_v6 }
 0x270   :  { %444 = vmatpush.xpose.msra.mxu2 %v422_v29 }
 0x271   :  { %677 = vmatpush.xpose.msrb.mxu1 %v669_v37 }
 0x274   :  { %445 = vmatpush.xpose.msra.mxu2 %v421_v26 }
 0x275   :  { %678 = vmatpush.xpose.msrb.mxu1 %v668_v22 }
 0x277   :  { %1749 = vmatmul.msk.f32.gmra.mxu1 %vm49_vm0, %v2047_v7 }
 0x278   :  { %446 = vmatpush.xpose.msra.mxu2 %v420_v1 }
 0x279   :  { %679 = vmatpush.xpose.msrb.mxu1 %v667_v20 }
 0x27c   :  { %447 = vmatpush.xpose.msra.mxu2 %v419_v50 }
 0x27d   :  { %680 = vmatpush.xpose.msrb.mxu1 %v666_v47 }
 0x27f   :  { %1750 = vmatmul.msk.f32.gmra.mxu1 %vm49_vm0, %v2056_v8 }
 0x280   :  { %448 = vmatpush.xpose.msra.mxu2 %v418_v23 }
 0x281   :  { %681 = vmatpush.xpose.msrb.mxu1 %v665_v25 }
 0x284   :  { %449 = vmatpush.xpose.msra.mxu2 %v417_v51 }
 0x287   :  { %450 = vmatmul.f32.vlgmr.msra.gmra.mxu2 %v433_v54  ;;  %1751 = vmatmul.msk.f32.gmra.mxu1 %vm49_vm0, %v2065_v9 }
 0x288   :  { %711 = vmatpush.msrb.mxu2 %v695_v45 }
 0x28f   :  { %1760 = vmatmul.msk.f32.vlgmr.msrb.gmra.mxu2 %vm49_vm0, %v2002_v2 }
 0x297   :  { %1761 = vmatmul.msk.f32.gmra.mxu2 %vm49_vm0, %v2011_v3 }
 0x29f   :  { %1762 = vmatmul.msk.f32.gmra.mxu2 %vm49_vm0, %v2020_v4 }
 0x2a7   :  { %1763 = vmatmul.msk.f32.gmra.mxu2 %vm49_vm0, %v2029_v5 }
 0x2af   :  { %1764 = vmatmul.msk.f32.gmra.mxu2 %vm49_vm0, %v2038_v6 }
 0x2b7   :  { %1765 = vmatmul.msk.f32.gmra.mxu2 %vm49_vm0, %v2047_v7 }
 0x2bf   :  { %1766 = vmatmul.msk.f32.gmra.mxu2 %vm49_vm0, %v2056_v8 }
 0x2c4   :  { %v2417_v42 = vpop.f32.mrf.mxu1 }
 0x2c7   :  { %1767 = vmatmul.msk.f32.gmra.mxu2 %vm49_vm0, %v2065_v9 }
 0x2cc   :  { %v593_v31 = vpop.f32.mrf.mxu1 }
 0x2cd   :  { %v641_v35 = vmul.f32 0.01, %v593_v31 }
 0x2cf   :  { %1768 = vmatmul.msk.f32.gmra.mxu2 %vm49_vm0, %v2074_v10  ;;  %v657_v49 = vmax.f32 %v593_v31, %v641_v35 }
 0x2d4   :  { %v596_v0 = vpop.f32.mrf.mxu1 }
 0x2d5   :  { %v642_v26 = vmul.f32 0.01, %v596_v0 }
 0x2d7   :  { %1769 = vmatmul.msk.f32.gmra.mxu2 %vm49_vm0, %v2083_v11  ;;  %v658_v1 = vmax.f32 %v596_v0, %v642_v26  ;;  %v935_v26 = vld [vmem:[%s2972_s1 + $0x38] sm:$0xff] }
 0x2dc   :  { %v599_v19 = vpop.f32.mrf.mxu1 }
 0x2dd   :  { %v643_v63 = vmul.f32 0.01, %v599_v19 }
 0x2df   :  { %1770 = vmatmul.msk.f32.gmra.mxu2 %vm49_vm0, %v2092_v12  ;;  %v659_v57 = vmax.f32 %v599_v19, %v643_v63 }
 0x2e4   :  { %v602_v34 = vpop.f32.mrf.mxu1 }
 0x2e5   :  { %v644_v61 = vmul.f32 0.01, %v602_v34 }
 0x2e7   :  { %1771 = vmatmul.msk.f32.gmra.mxu2 %vm49_vm0, %v2101_v13  ;;  %v660_v58 = vmax.f32 %v602_v34, %v644_v61 }
 0x2ec   :  { %v605_v39 = vpop.f32.mrf.mxu1 }
 0x2ed   :  { %v645_v43 = vmul.f32 0.01, %v605_v39 }
 0x2ef   :  { %1772 = vmatmul.msk.f32.gmra.mxu2 %vm49_vm0, %v2110_v14  ;;  %v661_v28 = vmax.f32 %v605_v39, %v645_v43 }
 0x2f4   :  { %v608_v52 = vpop.f32.mrf.mxu1 }
 0x2f5   :  { %v646_v48 = vmul.f32 0.01, %v608_v52 }
 0x2f7   :  { %1773 = vmatmul.msk.f32.gmra.mxu2 %vm49_vm0, %v2119_v15  ;;  %v662_v30 = vmax.f32 %v608_v52, %v646_v48 }
 0x2fc   :  { %v611_v32 = vpop.f32.mrf.mxu1 }
 0x2fd   :  { %v647_v59 = vmul.f32 0.01, %v611_v32 }
 0x2ff   :  { %1774 = vmatmul.msk.f32.gmra.mxu2 %vm49_vm0, %v2128_v16  ;;  %v663_v27 = vmax.f32 %v611_v32, %v647_v59 }
 0x304   :  { %v614_v33 = vpop.f32.mrf.mxu1 }
 0x305   :  { %v648_v21 = vmul.f32 0.01, %v614_v33 }
 0x307   :  { %v664_v60 = vmax.f32 %v614_v33, %v648_v21  ;;  %1775 = vmatmul.msk.f32.gmra.mxu2 %vm49_vm0, %v2979_v18 }
 0x309   :  { %682 = vmatpush.xpose.msrb.mxu1 %v664_v60 }
 0x30a   :  { %v2437_v17 = vpop.f32.mrf.mxu2 }
 0x30d   :  { %683 = vmatpush.xpose.msrb.mxu1 %v663_v27 }
 0x311   :  { %684 = vmatpush.xpose.msrb.mxu1 %v662_v30 }
 0x312   :  { %v2439_v29 = vpop.f32.mrf.mxu2 }
 0x313   :  { %v761_v61 = vmul.f32 0.01, %v2439_v29 }
 0x315   :  { %685 = vmatpush.xpose.msrb.mxu1 %v661_v28 }
 0x319   :  { %686 = vmatpush.xpose.msrb.mxu1 %v660_v58  ;;  %v777_v58 = vmax.f32 %v2439_v29, %v761_v61 }
 0x31a   :  { %v2441_v62 = vpop.f32.mrf.mxu2 }
 0x31b   :  { %v762_v43 = vmul.f32 0.01, %v2441_v62 }
 0x31d   :  { %687 = vmatpush.xpose.msrb.mxu1 %v659_v57  ;;  %v778_v28 = vmax.f32 %v2441_v62, %v762_v43  ;;  %v793_v57 = vld [vmem:[#allocation2 + $0x28] sm:$0xff]  ;;  %v2518_v62 = vld [vmem:[%s2971_s0] sm:$0xff] }
 0x321   :  { %688 = vmatpush.xpose.msrb.mxu1 %v658_v1 }
 0x322   :  { %v2443_v36 = vpop.f32.mrf.mxu2 }
 0x323   :  { %v763_v48 = vmul.f32 0.01, %v2443_v36 }
 0x325   :  { %689 = vmatpush.xpose.msrb.mxu1 %v657_v49  ;;  %v779_v30 = vmax.f32 %v2443_v36, %v763_v48  ;;  %v2527_v36 = vld [vmem:[%s2971_s0 + $0x8] sm:$0xff] }
 0x328   :  { %690 = vmatmul.f32.vlgmr.msrb.gmra.mxu1 %v673_v56 }
 0x329   :  { %831 = vmatpush.msra.mxu1 %v815_v24  ;;  %v2534_v24 = vld [vmem:[%s2971_s0 + $0x10] sm:$0xff] }
 0x32a   :  { %v2448_v37 = vpop.f32.mrf.mxu2 }
 0x32b   :  { %v764_v59 = vmul.f32 0.01, %v2448_v37 }
 0x32d   :  { %v780_v60 = vmax.f32 %v2448_v37, %v764_v59  ;;  %v2541_v37 = vld [vmem:[%s2971_s0 + $0x18] sm:$0xff] }
 0x330   :  { %1776 = vmatmul.msk.f32.vlgmr.msra.gmra.mxu1 %vm49_vm0, %v2002_v2 }
 0x332   :  { %v2452_v38 = vpop.f32.mrf.mxu2 }
 0x338   :  { %1777 = vmatmul.msk.f32.gmra.mxu1 %vm49_vm0, %v2011_v3 }
 0x33a   :  { %v2456_v50 = vpop.f32.mrf.mxu2 }
 0x33b   :  { %v766_v52 = vmul.f32 0.01, %v2456_v50 }
 0x33d   :  { %v782_v33 = vmax.f32 %v2456_v50, %v766_v52  ;;  %v2548_v50 = vld [vmem:[%s2971_s0 + $0x20] sm:$0xff] }
 0x340   :  { %1778 = vmatmul.msk.f32.gmra.mxu1 %vm49_vm0, %v2020_v4 }
 0x342   :  { %v731_v40 = vpop.f32.mrf.mxu2 }
 0x348   :  { %1779 = vmatmul.msk.f32.gmra.mxu1 %vm49_vm0, %v2029_v5 }
 0x34a   :  { %v734_v22 = vpop.f32.mrf.mxu2 }
 0x34b   :  { %v768_v0 = vmul.f32 0.01, %v734_v22 }
 0x34d   :  { %v784_v34 = vmax.f32 %v734_v22, %v768_v0  ;;  %v2555_v22 = vld [vmem:[%s2971_s0 + $0x28] sm:$0xff] }
 0x350   :  { %1780 = vmatmul.msk.f32.gmra.mxu1 %vm49_vm0, %v2038_v6 }
 0x352   :  { %v737_v53 = vpop.f32.mrf.mxu2 }
 0x353   :  { %v769_v25 = vmul.f32 0.01, %v737_v53 }
 0x355   :  { %v785_v19 = vmax.f32 %v737_v53, %v769_v25 }
 0x358   :  { %1781 = vmatmul.msk.f32.gmra.mxu1 %vm49_vm0, %v2047_v7 }
 0x35a   :  { %v740_v2 = vpop.f32.mrf.mxu2 }
 0x35b   :  { %v770_v55 = vmul.f32 0.01, %v740_v2 }
 0x360   :  { %1782 = vmatmul.msk.f32.gmra.mxu1 %vm49_vm0, %v2056_v8 }
 0x362   :  { %v743_v3 = vpop.f32.mrf.mxu2 }
 0x368   :  { %1783 = vmatmul.msk.f32.gmra.mxu1 %vm49_vm0, %v2065_v9 }
 0x36a   :  { %v746_v4 = vpop.f32.mrf.mxu2 }
 0x36b   :  { %v772_v45 = vmul.f32 0.01, %v746_v4 }
 0x370   :  { %1784 = vmatmul.msk.f32.gmra.mxu1 %vm49_vm0, %v2074_v10 }
 0x372   :  { %v749_v5 = vpop.f32.mrf.mxu2 }
 0x373   :  { %v773_v10 = vmul.f32 0.01, %v749_v5 }
 0x375   :  { %v789_v54 = vmax.f32 %v749_v5, %v773_v10 }
 0x378   :  { %1785 = vmatmul.msk.f32.gmra.mxu1 %vm49_vm0, %v2083_v11 }
 0x37a   :  { %v752_v6 = vpop.f32.mrf.mxu2 }
 0x37b   :  { %v774_v20 = vmul.f32 0.01, %v752_v6 }
 0x37d   :  { %v790_v11 = vmax.f32 %v752_v6, %v774_v20  ;;  %v2576_v6 = vld [vmem:[%s2971_s0 + $0x40] sm:$0xff] }
 0x380   :  { %1786 = vmatmul.msk.f32.gmra.mxu1 %vm49_vm0, %v2092_v12  ;;  %v771_v12 = vmul.f32 0.01, %v743_v3 }
 0x382   :  { %v755_v7 = vpop.f32.mrf.mxu2  ;;  %v787_v47 = vmax.f32 %v743_v3, %v771_v12 }
 0x383   :  { %v775_v23 = vmul.f32 0.01, %v755_v7 }
 0x385   :  { %v791_v51 = vmax.f32 %v755_v7, %v775_v23 }
 0x388   :  { %1787 = vmatmul.msk.f32.gmra.mxu1 %vm49_vm0, %v2101_v13  ;;  %v788_v13 = vmax.f32 %v746_v4, %v772_v45  ;;  %v2569_v4 = vld [vmem:[%s2971_s0 + $0x38] sm:$0xff] }
 0x389   :  { %v2597_v45 = vld [vmem:[%s2971_s0 + $0x58] sm:$0xff] }
 0x38a   :  { %v758_v8 = vpop.f32.mrf.mxu2 }
 0x38b   :  { %v776_v41 = vmul.f32 0.01, %v758_v8 }
 0x38d   :  { %v792_v9 = vmax.f32 %v758_v8, %v776_v41  ;;  %v2583_v8 = vld [vmem:[%s2971_s0 + $0x48] sm:$0xff] }
 0x38f   :  { %794 = vmatpush.xpose.msra.mxu0 %v792_v9  ;;  %v2590_v9 = vld [vmem:[%s2971_s0 + $0x50] sm:$0xff] }
 0x390   :  { %1788 = vmatmul.msk.f32.gmra.mxu1 %vm49_vm0, %v2110_v14  ;;  %v786_v14 = vmax.f32 %v740_v2, %v770_v55  ;;  %v2562_v2 = vld [vmem:[%s2971_s0 + $0x30] sm:$0xff] }
 0x393   :  { %795 = vmatpush.xpose.msra.mxu0 %v791_v51 }
 0x397   :  { %796 = vmatpush.xpose.msra.mxu0 %v790_v11 }
 0x398   :  { %1789 = vmatmul.msk.f32.gmra.mxu1 %vm49_vm0, %v2119_v15  ;;  %v767_v15 = vmul.f32 0.01, %v731_v40 }
 0x39a   :  { %v783_v32 = vmax.f32 %v731_v40, %v767_v15  ;;  %v2611_v15 = vld [vmem:[%s2971_s0 + $0x68] sm:$0xff] }
 0x39b   :  { %797 = vmatpush.xpose.msra.mxu0 %v789_v54 }
 0x39f   :  { %798 = vmatpush.xpose.msra.mxu0 %v788_v13 }
 0x3a0   :  { %1790 = vmatmul.msk.f32.gmra.mxu1 %vm49_vm0, %v2128_v16  ;;  %v765_v16 = vmul.f32 0.01, %v2452_v38 }
 0x3a3   :  { %799 = vmatpush.xpose.msra.mxu0 %v787_v47  ;;  %v2604_v47 = vld [vmem:[%s2971_s0 + $0x60] sm:$0xff] }
 0x3a5   :  { %v2484_v31 = vpop.f32.mrf.mxu1 }
 0x3a7   :  { %800 = vmatpush.xpose.msra.mxu0 %v786_v14 }
 0x3a8   :  { %1791 = vmatmul.msk.f32.gmra.mxu1 %vm49_vm0, %v2979_v18  ;;  %v781_v18 = vmax.f32 %v2452_v38, %v765_v16 }
 0x3ab   :  { %801 = vmatpush.xpose.msra.mxu0 %v785_v19 }
 0x3ad   :  { %v2488_v39 = vpop.f32.mrf.mxu1 }
 0x3af   :  { %802 = vmatpush.xpose.msra.mxu0 %v784_v34 }
 0x3b3   :  { %803 = vmatpush.xpose.msra.mxu0 %v783_v32 }
 0x3b5   :  { %v2493_v21 = vpop.f32.mrf.mxu1 }
 0x3b7   :  { %804 = vmatpush.xpose.msra.mxu0 %v782_v33  ;;  %v2618_v33 = vld [vmem:[%s2971_s0 + $0x70] sm:$0xff] }
 0x3bb   :  { %805 = vmatpush.xpose.msra.mxu0 %v781_v18 }
 0x3bd   :  { %v2499_v27 = vpop.f32.mrf.mxu1 }
 0x3bf   :  { %806 = vmatpush.xpose.msra.mxu0 %v780_v60 }
 0x3c3   :  { %807 = vmatpush.xpose.msra.mxu0 %v779_v30  ;;  %v2630_v30 = vld [vmem:[%s2971_s0 + $0x78] sm:$0xff] }
 0x3c5   :  { %v2505_v63 = vpop.f32.mrf.mxu1 }
 0x3c7   :  { %808 = vmatpush.xpose.msra.mxu0 %v778_v28 }
 0x3cb   :  { %809 = vmatpush.xpose.msra.mxu0 %v777_v58 }
 0x3cd   :  { %v2511_v35 = vpop.f32.mrf.mxu1 }
 0x3ce   :  { %810 = vmatmul.f32.vlgmr.msra.gmra.mxu0 %v793_v57  ;;  %v885_v61 = vmul.f32 0.01, %v2511_v35 }
 0x3cf   :  { %951 = vmatpush.msrb.mxu0 %v935_v26  ;;  %v884_v26 = vmul.f32 0.01, %v2505_v63 }
 0x3d0   :  { %v901_v57 = vmax.f32 %v2511_v35, %v885_v61 }
 0x3d5   :  { %v2513_v1 = vpop.f32.mrf.mxu1 }
 0x3d6   :  { %1792 = vmatmul.msk.f32.vlgmr.msrb.gmra.mxu0 %vm49_vm0, %v2518_v62  ;;  %v886_v48 = vmul.f32 0.01, %v2513_v1 }
 0x3d8   :  { %v902_v28 = vmax.f32 %v2513_v1, %v886_v48  ;;  %v881_v1 = vmul.f32 0.01, %v2488_v39 }
 0x3da   :  { %v897_v35 = vmax.f32 %v2488_v39, %v881_v1 }
 0x3dd   :  { %v2522_v29 = vpop.f32.mrf.mxu1 }
 0x3de   :  { %1793 = vmatmul.msk.f32.gmra.mxu0 %vm49_vm0, %v2527_v36  ;;  %v887_v59 = vmul.f32 0.01, %v2522_v29 }
 0x3e0   :  { %v903_v43 = vmax.f32 %v2522_v29, %v887_v59  ;;  %v883_v29 = vmul.f32 0.01, %v2499_v27 }
 0x3e5   :  { %v854_v49 = vpop.f32.mrf.mxu1 }
 0x3e6   :  { %1794 = vmatmul.msk.f32.gmra.mxu0 %vm49_vm0, %v2534_v24  ;;  %v888_v32 = vmul.f32 0.01, %v854_v49 }
 0x3e8   :  { %v904_v18 = vmax.f32 %v854_v49, %v888_v32  ;;  %v900_v49 = vmax.f32 %v2505_v63, %v884_v26  ;;  %v1055_v63 = vld [vmem:[%s2972_s1 + $0x40] sm:$0xff] }
 0x3ed   :  { %v857_v56 = vpop.f32.mrf.mxu1 }
 0x3ee   :  { %1795 = vmatmul.msk.f32.gmra.mxu0 %vm49_vm0, %v2541_v37  ;;  %v889_v34 = vmul.f32 0.01, %v857_v56 }
 0x3f0   :  { %v905_v16 = vmax.f32 %v857_v56, %v889_v34 }
 0x3f5   :  { %v860_v38 = vpop.f32.mrf.mxu1 }
 0x3f6   :  { %1796 = vmatmul.msk.f32.gmra.mxu0 %vm49_vm0, %v2548_v50  ;;  %v890_v0 = vmul.f32 0.01, %v860_v38 }
 0x3f8   :  { %v906_v52 = vmax.f32 %v860_v38, %v890_v0  ;;  %v882_v38 = vmul.f32 0.01, %v2493_v21 }
 0x3fd   :  { %v863_v40 = vpop.f32.mrf.mxu1 }
 0x3fe   :  { %1797 = vmatmul.msk.f32.gmra.mxu0 %vm49_vm0, %v2555_v22  ;;  %v891_v25 = vmul.f32 0.01, %v863_v40 }
 0x400   :  { %v907_v19 = vmax.f32 %v863_v40, %v891_v25  ;;  %v899_v40 = vmax.f32 %v2499_v27, %v883_v29 }
 0x405   :  { %v866_v53 = vpop.f32.mrf.mxu1 }
 0x406   :  { %1798 = vmatmul.msk.f32.gmra.mxu0 %vm49_vm0, %v2562_v2  ;;  %v892_v13 = vmul.f32 0.01, %v866_v53 }
 0x408   :  { %v908_v14 = vmax.f32 %v866_v53, %v892_v13  ;;  %v898_v53 = vmax.f32 %v2493_v21, %v882_v38 }
 0x40d   :  { %v869_v3 = vpop.f32.mrf.mxu1 }
 0x40e   :  { %1799 = vmatmul.msk.f32.gmra.mxu0 %vm49_vm0, %v2569_v4  ;;  %v893_v54 = vmul.f32 0.01, %v869_v3 }
 0x410   :  { %v909_v55 = vmax.f32 %v869_v3, %v893_v54 }
 0x415   :  { %v872_v5 = vpop.f32.mrf.mxu1 }
 0x416   :  { %1800 = vmatmul.msk.f32.gmra.mxu0 %vm49_vm0, %v2576_v6  ;;  %v894_v10 = vmul.f32 0.01, %v872_v5 }
 0x418   :  { %v910_v12 = vmax.f32 %v872_v5, %v894_v10  ;;  %v913_v5 = vld [vmem:[#allocation2 + $0x30] sm:$0xff] }
 0x41d   :  { %v875_v7 = vpop.f32.mrf.mxu1 }
 0x41e   :  { %1801 = vmatmul.msk.f32.gmra.mxu0 %vm49_vm0, %v2583_v8  ;;  %v895_v20 = vmul.f32 0.01, %v875_v7 }
 0x420   :  { %v911_v11 = vmax.f32 %v875_v7, %v895_v20 }
 0x425   :  { %v878_v23 = vpop.f32.mrf.mxu1 }
 0x426   :  { %v896_v41 = vmul.f32 0.01, %v878_v23  ;;  %1802 = vmatmul.msk.f32.gmra.mxu0 %vm49_vm0, %v2590_v9 }
 0x428   :  { %v912_v51 = vmax.f32 %v878_v23, %v896_v41 }
 0x42a   :  { %914 = vmatpush.xpose.msrb.mxu3 %v912_v51 }
 0x42e   :  { %915 = vmatpush.xpose.msrb.mxu3 %v911_v11  ;;  %1803 = vmatmul.msk.f32.gmra.mxu0 %vm49_vm0, %v2597_v45 }
 0x432   :  { %916 = vmatpush.xpose.msrb.mxu3 %v910_v12 }
 0x436   :  { %917 = vmatpush.xpose.msrb.mxu3 %v909_v55  ;;  %1804 = vmatmul.msk.f32.gmra.mxu0 %vm49_vm0, %v2604_v47 }
 0x43a   :  { %918 = vmatpush.xpose.msrb.mxu3 %v908_v14 }
 0x43e   :  { %919 = vmatpush.xpose.msrb.mxu3 %v907_v19  ;;  %1805 = vmatmul.msk.f32.gmra.mxu0 %vm49_vm0, %v2611_v15 }
 0x442   :  { %920 = vmatpush.xpose.msrb.mxu3 %v906_v52 }
 0x446   :  { %921 = vmatpush.xpose.msrb.mxu3 %v905_v16  ;;  %1806 = vmatmul.msk.f32.gmra.mxu0 %vm49_vm0, %v2618_v33 }
 0x44a   :  { %922 = vmatpush.xpose.msrb.mxu3 %v904_v18 }
 0x44b   :  { %v2623_v60 = vpop.f32.mrf.mxu0 }
 0x44e   :  { %923 = vmatpush.xpose.msrb.mxu3 %v903_v43  ;;  %1807 = vmatmul.msk.f32.gmra.mxu0 %vm49_vm0, %v2630_v30 }
 0x452   :  { %924 = vmatpush.xpose.msrb.mxu3 %v902_v28 }
 0x453   :  { %v2636_v58 = vpop.f32.mrf.mxu0 }
 0x456   :  { %925 = vmatpush.xpose.msrb.mxu3 %v901_v57 }
 0x45a   :  { %926 = vmatpush.xpose.msrb.mxu3 %v900_v49 }
 0x45b   :  { %v2642_v56 = vpop.f32.mrf.mxu0 }
 0x45e   :  { %927 = vmatpush.xpose.msrb.mxu3 %v899_v40 }
 0x462   :  { %928 = vmatpush.xpose.msrb.mxu3 %v898_v53 }
 0x463   :  { %v2648_v3 = vpop.f32.mrf.mxu0 }
 0x466   :  { %929 = vmatpush.xpose.msrb.mxu3 %v897_v35 }
 0x469   :  { %930 = vmatmul.f32.vlgmr.msrb.gmra.mxu3 %v913_v5 }
 0x46a   :  { %1071 = vmatpush.msra.mxu3 %v1055_v63 }
 0x46b   :  { %v2654_v7 = vpop.f32.mrf.mxu0 }
 0x46c   :  { %v1004_v5 = vmul.f32 0.01, %v2654_v7 }
 0x471   :  { %1808 = vmatmul.msk.f32.vlgmr.msra.gmra.mxu3 %vm49_vm0, %v2518_v62 }
 0x473   :  { %v2658_v27 = vpop.f32.mrf.mxu0 }
 0x474   :  { %v1005_v53 = vmul.f32 0.01, %v2658_v27 }
 0x479   :  { %1809 = vmatmul.msk.f32.gmra.mxu3 %vm49_vm0, %v2527_v36 }
 0x47b   :  { %v968_v21 = vpop.f32.mrf.mxu0 }
 0x47c   :  { %v1006_v40 = vmul.f32 0.01, %v968_v21 }
 0x47e   :  { %v1022_v35 = vmax.f32 %v968_v21, %v1006_v40 }
 0x481   :  { %1810 = vmatmul.msk.f32.gmra.mxu3 %vm49_vm0, %v2534_v24 }
 0x483   :  { %v971_v39 = vpop.f32.mrf.mxu0 }
 0x484   :  { %v1007_v29 = vmul.f32 0.01, %v971_v39 }
 0x486   :  { %v1023_v1 = vmax.f32 %v971_v39, %v1007_v29  ;;  %v1002_v39 = vmul.f32 0.01, %v2642_v56 }
 0x489   :  { %1811 = vmatmul.msk.f32.gmra.mxu3 %vm49_vm0, %v2541_v37 }
 0x48b   :  { %v974_v23 = vpop.f32.mrf.mxu0 }
 0x48c   :  { %v1008_v26 = vmul.f32 0.01, %v974_v23 }
 0x48e   :  { %v1024_v49 = vmax.f32 %v974_v23, %v1008_v26 }
 0x491   :  { %1812 = vmatmul.msk.f32.gmra.mxu3 %vm49_vm0, %v2548_v50 }
 0x493   :  { %v977_v41 = vpop.f32.mrf.mxu0 }
 0x494   :  { %v1009_v61 = vmul.f32 0.01, %v977_v41 }
 0x496   :  { %v1025_v57 = vmax.f32 %v977_v41, %v1009_v61  ;;  %v1021_v41 = vmax.f32 %v2658_v27, %v1005_v53  ;;  %v1018_v27 = vmax.f32 %v2642_v56, %v1002_v39 }
 0x499   :  { %1813 = vmatmul.msk.f32.gmra.mxu3 %vm49_vm0, %v2555_v22 }
 0x49b   :  { %v980_v20 = vpop.f32.mrf.mxu0 }
 0x49c   :  { %v1010_v48 = vmul.f32 0.01, %v980_v20 }
 0x49e   :  { %v1026_v28 = vmax.f32 %v980_v20, %v1010_v48  ;;  %v1020_v20 = vmax.f32 %v2654_v7, %v1004_v5 }
 0x4a1   :  { %1814 = vmatmul.msk.f32.gmra.mxu3 %vm49_vm0, %v2562_v2 }
 0x4a3   :  { %v983_v51 = vpop.f32.mrf.mxu0 }
 0x4a4   :  { %v1011_v59 = vmul.f32 0.01, %v983_v51 }
 0x4a6   :  { %v1027_v43 = vmax.f32 %v983_v51, %v1011_v59  ;;  %v1003_v51 = vmul.f32 0.01, %v2648_v3 }
 0x4a8   :  { %v1019_v21 = vmax.f32 %v2648_v3, %v1003_v51 }
 0x4a9   :  { %1815 = vmatmul.msk.f32.gmra.mxu3 %vm49_vm0, %v2569_v4 }
 0x4ab   :  { %v986_v10 = vpop.f32.mrf.mxu0 }
 0x4ac   :  { %v1012_v32 = vmul.f32 0.01, %v986_v10 }
 0x4ae   :  { %v1028_v18 = vmax.f32 %v986_v10, %v1012_v32 }
 0x4b1   :  { %1816 = vmatmul.msk.f32.gmra.mxu3 %vm49_vm0, %v2576_v6 }
 0x4b3   :  { %v989_v11 = vpop.f32.mrf.mxu0 }
 0x4b4   :  { %v1013_v34 = vmul.f32 0.01, %v989_v11 }
 0x4b6   :  { %v1029_v16 = vmax.f32 %v989_v11, %v1013_v34  ;;  %v1001_v11 = vmul.f32 0.01, %v2636_v58 }
 0x4b8   :  { %v1017_v7 = vmax.f32 %v2636_v58, %v1001_v11 }
 0x4b9   :  { %1817 = vmatmul.msk.f32.gmra.mxu3 %vm49_vm0, %v2583_v8 }
 0x4bb   :  { %v992_v54 = vpop.f32.mrf.mxu0 }
 0x4bc   :  { %v1014_v0 = vmul.f32 0.01, %v992_v54 }
 0x4be   :  { %v1030_v52 = vmax.f32 %v992_v54, %v1014_v0  ;;  %v1175_v54 = vld [vmem:[%s2972_s1 + $0x48] sm:$0xff] }
 0x4c1   :  { %1818 = vmatmul.msk.f32.gmra.mxu3 %vm49_vm0, %v2590_v9 }
 0x4c3   :  { %v995_v12 = vpop.f32.mrf.mxu0 }
 0x4c4   :  { %v1015_v55 = vmul.f32 0.01, %v995_v12 }
 0x4c6   :  { %v1031_v19 = vmax.f32 %v995_v12, %v1015_v55 }
 0x4c9   :  { %1819 = vmatmul.msk.f32.gmra.mxu3 %vm49_vm0, %v2597_v45 }
 0x4cb   :  { %v998_v13 = vpop.f32.mrf.mxu0 }
 0x4cc   :  { %v1016_v25 = vmul.f32 0.01, %v998_v13 }
 0x4ce   :  { %v1032_v14 = vmax.f32 %v998_v13, %v1016_v25  ;;  %v1033_v13 = vld [vmem:[#allocation2 + $0x38] sm:$0xff] }
 0x4d0   :  { %1034 = vmatpush.xpose.msra.mxu2 %v1032_v14 }
 0x4d1   :  { %1820 = vmatmul.msk.f32.gmra.mxu3 %vm49_vm0, %v2604_v47 }
 0x4d4   :  { %1035 = vmatpush.xpose.msra.mxu2 %v1031_v19 }
 0x4d8   :  { %1036 = vmatpush.xpose.msra.mxu2 %v1030_v52 }
 0x4d9   :  { %1821 = vmatmul.msk.f32.gmra.mxu3 %vm49_vm0, %v2611_v15 }
 0x4dc   :  { %1037 = vmatpush.xpose.msra.mxu2 %v1029_v16 }
 0x4e0   :  { %1038 = vmatpush.xpose.msra.mxu2 %v1028_v18 }
 0x4e1   :  { %1822 = vmatmul.msk.f32.gmra.mxu3 %vm49_vm0, %v2618_v33 }
 0x4e4   :  { %1039 = vmatpush.xpose.msra.mxu2 %v1027_v43 }
 0x4e8   :  { %1040 = vmatpush.xpose.msra.mxu2 %v1026_v28 }
 0x4e9   :  { %1823 = vmatmul.msk.f32.gmra.mxu3 %vm49_vm0, %v2630_v30 }
 0x4ec   :  { %v2690_v38 = vpop.f32.mrf.mxu3  ;;  %1041 = vmatpush.xpose.msra.mxu2 %v1025_v57 }
 0x4f0   :  { %1042 = vmatpush.xpose.msra.mxu2 %v1024_v49 }
 0x4f4   :  { %1043 = vmatpush.xpose.msra.mxu2 %v1023_v1  ;;  %v2693_v63 = vpop.f32.mrf.mxu3 }
 0x4f8   :  { %1044 = vmatpush.xpose.msra.mxu2 %v1022_v35 }
 0x4fc   :  { %1045 = vmatpush.xpose.msra.mxu2 %v1021_v41  ;;  %v2698_v23 = vpop.f32.mrf.mxu3 }
 0x500   :  { %1046 = vmatpush.xpose.msra.mxu2 %v1020_v20 }
 0x504   :  { %1047 = vmatpush.xpose.msra.mxu2 %v1019_v21  ;;  %v2703_v10 = vpop.f32.mrf.mxu3 }
 0x508   :  { %1048 = vmatpush.xpose.msra.mxu2 %v1018_v27 }
 0x50c   :  { %1049 = vmatpush.xpose.msra.mxu2 %v1017_v7  ;;  %v2711_v12 = vpop.f32.mrf.mxu3 }
 0x50f   :  { %1050 = vmatmul.f32.vlgmr.msra.gmra.mxu2 %v1033_v13 }
 0x510   :  { %1191 = vmatpush.msrb.mxu2 %v1175_v54 }
 0x514   :  { %v2713_v3 = vpop.f32.mrf.mxu3 }
 0x515   :  { %v1125_v7 = vmul.f32 0.01, %v2713_v3 }
 0x517   :  { %1824 = vmatmul.msk.f32.vlgmr.msrb.gmra.mxu2 %vm49_vm0, %v2518_v62 }
 0x51c   :  { %v1088_v55 = vpop.f32.mrf.mxu3 }
 0x51d   :  { %v1126_v11 = vmul.f32 0.01, %v1088_v55 }
 0x51f   :  { %1825 = vmatmul.msk.f32.gmra.mxu2 %vm49_vm0, %v2527_v36  ;;  %v1142_v54 = vmax.f32 %v1088_v55, %v1126_v11  ;;  %v1121_v55 = vmul.f32 0.01, %v2693_v63 }
 0x524   :  { %v1091_v58 = vpop.f32.mrf.mxu3 }
 0x525   :  { %v1127_v51 = vmul.f32 0.01, %v1091_v58 }
 0x527   :  { %1826 = vmatmul.msk.f32.gmra.mxu2 %vm49_vm0, %v2534_v24  ;;  %v1143_v27 = vmax.f32 %v1091_v58, %v1127_v51  ;;  %v1122_v58 = vmul.f32 0.01, %v2698_v23  ;;  %v333_v51 = vadd.f32 %v2303_v44, %v2301_v46 }
 0x52c   :  { %v1094_v56 = vpop.f32.mrf.mxu3 }
 0x52d   :  { %v1128_v41 = vmul.f32 0.01, %v1094_v56 }
 0x52f   :  { %1827 = vmatmul.msk.f32.gmra.mxu2 %vm49_vm0, %v2541_v37  ;;  %v1144_v39 = vmax.f32 %v1094_v56, %v1128_v41  ;;  %v1123_v56 = vmul.f32 0.01, %v2703_v10 }
 0x534   :  { %v1097_v25 = vpop.f32.mrf.mxu3 }
 0x535   :  { %v1129_v35 = vmul.f32 0.01, %v1097_v25 }
 0x537   :  { %1828 = vmatmul.msk.f32.gmra.mxu2 %vm49_vm0, %v2548_v50  ;;  %v1145_v20 = vmax.f32 %v1097_v25, %v1129_v35  ;;  %v1124_v25 = vmul.f32 0.01, %v2711_v12 }
 0x53c   :  { %v1100_v14 = vpop.f32.mrf.mxu3 }
 0x53d   :  { %v1130_v1 = vmul.f32 0.01, %v1100_v14 }
 0x53f   :  { %1829 = vmatmul.msk.f32.gmra.mxu2 %vm49_vm0, %v2555_v22  ;;  %v1146_v5 = vmax.f32 %v1100_v14, %v1130_v1  ;;  %v1141_v14 = vmax.f32 %v2713_v3, %v1125_v7  ;;  %v1137_v3 = vmax.f32 %v2693_v63, %v1121_v55 }
 0x544   :  { %v1103_v0 = vpop.f32.mrf.mxu3 }
 0x545   :  { %v1131_v49 = vmul.f32 0.01, %v1103_v0 }
 0x547   :  { %1830 = vmatmul.msk.f32.gmra.mxu2 %vm49_vm0, %v2562_v2  ;;  %v1147_v53 = vmax.f32 %v1103_v0, %v1131_v49  ;;  %v1140_v0 = vmax.f32 %v2711_v12, %v1124_v25  ;;  %v1295_v12 = vld [vmem:[%s2972_s1 + $0x50] sm:$0xff] }
 0x54c   :  { %v1106_v19 = vpop.f32.mrf.mxu3 }
 0x54d   :  { %v1132_v57 = vmul.f32 0.01, %v1106_v19 }
 0x54f   :  { %1831 = vmatmul.msk.f32.gmra.mxu2 %vm49_vm0, %v2569_v4  ;;  %v1148_v40 = vmax.f32 %v1106_v19, %v1132_v57 }
 0x554   :  { %v1109_v34 = vpop.f32.mrf.mxu3 }
 0x555   :  { %v1133_v28 = vmul.f32 0.01, %v1109_v34 }
 0x557   :  { %1832 = vmatmul.msk.f32.gmra.mxu2 %vm49_vm0, %v2576_v6  ;;  %v1149_v29 = vmax.f32 %v1109_v34, %v1133_v28  ;;  %v1139_v34 = vmax.f32 %v2703_v10, %v1123_v56 }
 0x55c   :  { %v1112_v52 = vpop.f32.mrf.mxu3 }
 0x55d   :  { %v1134_v43 = vmul.f32 0.01, %v1112_v52 }
 0x55f   :  { %1833 = vmatmul.msk.f32.gmra.mxu2 %vm49_vm0, %v2583_v8  ;;  %v1150_v26 = vmax.f32 %v1112_v52, %v1134_v43  ;;  %v1138_v52 = vmax.f32 %v2698_v23, %v1122_v58 }
 0x564   :  { %v1115_v32 = vpop.f32.mrf.mxu3 }
 0x565   :  { %v1135_v18 = vmul.f32 0.01, %v1115_v32 }
 0x567   :  { %1834 = vmatmul.msk.f32.gmra.mxu2 %vm49_vm0, %v2590_v9  ;;  %v1151_v61 = vmax.f32 %v1115_v32, %v1135_v18 }
 0x56c   :  { %v1118_v16 = vpop.f32.mrf.mxu3 }
 0x56d   :  { %v1136_v59 = vmul.f32 0.01, %v1118_v16 }
 0x56f   :  { %v1152_v48 = vmax.f32 %v1118_v16, %v1136_v59  ;;  %1835 = vmatmul.msk.f32.gmra.mxu2 %vm49_vm0, %v2597_v45  ;;  %v1153_v16 = vld [vmem:[#allocation2 + $0x40] sm:$0xff] }
 0x571   :  { %1154 = vmatpush.xpose.msrb.mxu1 %v1152_v48 }
 0x575   :  { %1155 = vmatpush.xpose.msrb.mxu1 %v1151_v61 }
 0x577   :  { %1836 = vmatmul.msk.f32.gmra.mxu2 %vm49_vm0, %v2604_v47 }
 0x579   :  { %1156 = vmatpush.xpose.msrb.mxu1 %v1150_v26 }
 0x57d   :  { %1157 = vmatpush.xpose.msrb.mxu1 %v1149_v29 }
 0x57f   :  { %1837 = vmatmul.msk.f32.gmra.mxu2 %vm49_vm0, %v2611_v15 }
 0x581   :  { %1158 = vmatpush.xpose.msrb.mxu1 %v1148_v40 }
 0x585   :  { %1159 = vmatpush.xpose.msrb.mxu1 %v1147_v53 }
 0x587   :  { %1838 = vmatmul.msk.f32.gmra.mxu2 %vm49_vm0, %v2618_v33 }
 0x589   :  { %1160 = vmatpush.xpose.msrb.mxu1 %v1146_v5 }
 0x58d   :  { %1161 = vmatpush.xpose.msrb.mxu1 %v1145_v20 }
 0x58f   :  { %1839 = vmatmul.msk.f32.gmra.mxu2 %vm49_vm0, %v2630_v30 }
 0x591   :  { %1162 = vmatpush.xpose.msrb.mxu1 %v1144_v39 }
 0x592   :  { %v2747_v21 = vpop.f32.mrf.mxu2 }
 0x595   :  { %1163 = vmatpush.xpose.msrb.mxu1 %v1143_v27  ;;  %v454_v27 = vadd.f32 %v2437_v17, %v333_v51 }
 0x597   :  { %v574_v25 = vadd.f32 %v2417_v42, %v454_v27 }
 0x599   :  { %1164 = vmatpush.xpose.msrb.mxu1 %v1142_v54 }
 0x59a   :  { %v2750_v13 = vpop.f32.mrf.mxu2 }
 0x59d   :  { %1165 = vmatpush.xpose.msrb.mxu1 %v1141_v14  ;;  %v694_v14 = vadd.f32 %v2484_v31, %v574_v25 }
 0x59f   :  { %v814_v46 = vadd.f32 %v2623_v60, %v694_v14 }
 0x5a1   :  { %1166 = vmatpush.xpose.msrb.mxu1 %v1140_v0  ;;  %v934_v44 = vadd.f32 %v2690_v38, %v814_v46 }
 0x5a2   :  { %v2756_v19 = vpop.f32.mrf.mxu2 }
 0x5a5   :  { %1167 = vmatpush.xpose.msrb.mxu1 %v1139_v34  ;;  %v1054_v34 = vadd.f32 %v2747_v21, %v934_v44 }
 0x5a9   :  { %1168 = vmatpush.xpose.msrb.mxu1 %v1138_v52 }
 0x5aa   :  { %v2762_v32 = vpop.f32.mrf.mxu2 }
 0x5ad   :  { %1169 = vmatpush.xpose.msrb.mxu1 %v1137_v3 }
 0x5b0   :  { %1170 = vmatmul.f32.vlgmr.msrb.gmra.mxu1 %v1153_v16 }
 0x5b1   :  { %1311 = vmatpush.msra.mxu1 %v1295_v12 }
 0x5b2   :  { %v2768_v59 = vpop.f32.mrf.mxu2 }
 0x5b8   :  { %1840 = vmatmul.msk.f32.vlgmr.msra.gmra.mxu1 %vm49_vm0, %v2518_v62 }
 0x5ba   :  { %v2772_v10 = vpop.f32.mrf.mxu2 }
 0x5bb   :  { %v1245_v21 = vmul.f32 0.01, %v2772_v10 }
 0x5c0   :  { %1841 = vmatmul.msk.f32.gmra.mxu1 %vm49_vm0, %v2527_v36 }
 0x5c2   :  { %v2776_v23 = vpop.f32.mrf.mxu2 }
 0x5c3   :  { %v1246_v38 = vmul.f32 0.01, %v2776_v23 }
 0x5c8   :  { %1842 = vmatmul.msk.f32.gmra.mxu1 %vm49_vm0, %v2534_v24 }
 0x5ca   :  { %v2780_v63 = vpop.f32.mrf.mxu2 }
 0x5cb   :  { %v1247_v60 = vmul.f32 0.01, %v2780_v63 }
 0x5cd   :  { %v1263_v16 = vmax.f32 %v2780_v63, %v1247_v60  ;;  %v1242_v63 = vmul.f32 0.01, %v2756_v19 }
 0x5d0   :  { %1843 = vmatmul.msk.f32.gmra.mxu1 %vm49_vm0, %v2541_v37 }
 0x5d2   :  { %v1214_v18 = vpop.f32.mrf.mxu2 }
 0x5d3   :  { %v1248_v42 = vmul.f32 0.01, %v1214_v18 }
 0x5d5   :  { %v1264_v3 = vmax.f32 %v1214_v18, %v1248_v42 }
 0x5d8   :  { %1844 = vmatmul.msk.f32.gmra.mxu1 %vm49_vm0, %v2548_v50 }
 0x5da   :  { %v1217_v48 = vpop.f32.mrf.mxu2 }
 0x5db   :  { %v1249_v17 = vmul.f32 0.01, %v1217_v48 }
 0x5dd   :  { %v1265_v31 = vmax.f32 %v1217_v48, %v1249_v17 }
 0x5e0   :  { %1845 = vmatmul.msk.f32.gmra.mxu1 %vm49_vm0, %v2555_v22 }
 0x5e2   :  { %v1220_v43 = vpop.f32.mrf.mxu2 }
 0x5e3   :  { %v1250_v56 = vmul.f32 0.01, %v1220_v43 }
 0x5e5   :  { %v1266_v58 = vmax.f32 %v1220_v43, %v1250_v56  ;;  %v1262_v43 = vmax.f32 %v2776_v23, %v1246_v38 }
 0x5e8   :  { %1846 = vmatmul.msk.f32.gmra.mxu1 %vm49_vm0, %v2562_v2 }
 0x5ea   :  { %v1223_v61 = vpop.f32.mrf.mxu2 }
 0x5eb   :  { %v1251_v7 = vmul.f32 0.01, %v1223_v61 }
 0x5ed   :  { %v1267_v0 = vmax.f32 %v1223_v61, %v1251_v7  ;;  %v1244_v61 = vmul.f32 0.01, %v2768_v59 }
 0x5ef   :  { %v1260_v18 = vmax.f32 %v2768_v59, %v1244_v61 }
 0x5f0   :  { %1847 = vmatmul.msk.f32.gmra.mxu1 %vm49_vm0, %v2569_v4 }
 0x5f2   :  { %v1226_v28 = vpop.f32.mrf.mxu2 }
 0x5f3   :  { %v1252_v39 = vmul.f32 0.01, %v1226_v28 }
 0x5f5   :  { %v1268_v54 = vmax.f32 %v1226_v28, %v1252_v39  ;;  %v1261_v28 = vmax.f32 %v2772_v10, %v1245_v21  ;;  %v1415_v10 = vld [vmem:[%s2972_s1 + $0x58] sm:$0xff] }
 0x5f8   :  { %1848 = vmatmul.msk.f32.gmra.mxu1 %vm49_vm0, %v2576_v6 }
 0x5fa   :  { %v1229_v26 = vpop.f32.mrf.mxu2 }
 0x5fb   :  { %v1253_v41 = vmul.f32 0.01, %v1229_v26 }
 0x5fd   :  { %v1269_v11 = vmax.f32 %v1229_v26, %v1253_v41  ;;  %v1243_v26 = vmul.f32 0.01, %v2762_v32 }
 0x5ff   :  { %v1259_v23 = vmax.f32 %v2762_v32, %v1243_v26 }
 0x600   :  { %1849 = vmatmul.msk.f32.gmra.mxu1 %vm49_vm0, %v2583_v8 }
 0x602   :  { %v1232_v57 = vpop.f32.mrf.mxu2 }
 0x603   :  { %v1254_v35 = vmul.f32 0.01, %v1232_v57 }
 0x605   :  { %v1270_v20 = vmax.f32 %v1232_v57, %v1254_v35 }
 0x608   :  { %1850 = vmatmul.msk.f32.gmra.mxu1 %vm49_vm0, %v2590_v9 }
 0x60a   :  { %v1235_v29 = vpop.f32.mrf.mxu2 }
 0x60b   :  { %v1255_v40 = vmul.f32 0.01, %v1235_v29 }
 0x60d   :  { %v1271_v5 = vmax.f32 %v1235_v29, %v1255_v40  ;;  %v1241_v29 = vmul.f32 0.01, %v2750_v13 }
 0x60f   :  { %v1257_v59 = vmax.f32 %v2750_v13, %v1241_v29 }
 0x610   :  { %1851 = vmatmul.msk.f32.gmra.mxu1 %vm49_vm0, %v2597_v45 }
 0x612   :  { %v1238_v49 = vpop.f32.mrf.mxu2 }
 0x613   :  { %v1256_v1 = vmul.f32 0.01, %v1238_v49 }
 0x615   :  { %v1272_v53 = vmax.f32 %v1238_v49, %v1256_v1  ;;  %v1258_v49 = vmax.f32 %v2756_v19, %v1242_v63  ;;  %v1273_v1 = vld [vmem:[#allocation2 + $0x48] sm:$0xff] }
 0x617   :  { %1274 = vmatpush.xpose.msra.mxu0 %v1272_v53 }
 0x618   :  { %1852 = vmatmul.msk.f32.gmra.mxu1 %vm49_vm0, %v2604_v47 }
 0x61b   :  { %1275 = vmatpush.xpose.msra.mxu0 %v1271_v5 }
 0x61f   :  { %1276 = vmatpush.xpose.msra.mxu0 %v1270_v20 }
 0x620   :  { %1853 = vmatmul.msk.f32.gmra.mxu1 %vm49_vm0, %v2611_v15 }
 0x623   :  { %1277 = vmatpush.xpose.msra.mxu0 %v1269_v11 }
 0x627   :  { %1278 = vmatpush.xpose.msra.mxu0 %v1268_v54 }
 0x628   :  { %1854 = vmatmul.msk.f32.gmra.mxu1 %vm49_vm0, %v2618_v33 }
 0x62b   :  { %1279 = vmatpush.xpose.msra.mxu0 %v1267_v0 }
 0x62d   :  { %v1171_v55 = vpop.f32.mrf.mxu1 }
 0x62e   :  { %v2814_v52 = vadd.f32 %v1171_v55, %v1054_v34 }
 0x62f   :  { %1280 = vmatpush.xpose.msra.mxu0 %v1266_v58 }
 0x630   :  { %1855 = vmatmul.msk.f32.gmra.mxu1 %vm49_vm0, %v2630_v30 }
 0x633   :  { %1281 = vmatpush.xpose.msra.mxu0 %v1265_v31 }
 0x635   :  { %v2819_v12 = vpop.f32.mrf.mxu1 }
 0x637   :  { %1282 = vmatpush.xpose.msra.mxu0 %v1264_v3 }
 0x63b   :  { %1283 = vmatpush.xpose.msra.mxu0 %v1263_v16 }
 0x63d   :  { %v2825_v48 = vpop.f32.mrf.mxu1 }
 0x63f   :  { %1284 = vmatpush.xpose.msra.mxu0 %v1262_v43 }
 0x643   :  { %1285 = vmatpush.xpose.msra.mxu0 %v1261_v28 }
 0x645   :  { %v2831_v57 = vpop.f32.mrf.mxu1 }
 0x647   :  { %1286 = vmatpush.xpose.msra.mxu0 %v1260_v18 }
 0x64b   :  { %1287 = vmatpush.xpose.msra.mxu0 %v1259_v23 }
 0x64d   :  { %v2837_v40 = vpop.f32.mrf.mxu1 }
 0x64e   :  { %v1364_v29 = vmul.f32 0.01, %v2837_v40 }
 0x64f   :  { %1288 = vmatpush.xpose.msra.mxu0 %v1258_v49 }
 0x653   :  { %1289 = vmatpush.xpose.msra.mxu0 %v1257_v59  ;;  %v1363_v59 = vmul.f32 0.01, %v2831_v57 }
 0x655   :  { %v2843_v53 = vpop.f32.mrf.mxu1 }
 0x656   :  { %1290 = vmatmul.f32.vlgmr.msra.gmra.mxu0 %v1273_v1  ;;  %v1365_v26 = vmul.f32 0.01, %v2843_v53  ;;  %v1362_v1 = vmul.f32 0.01, %v2825_v48 }
 0x657   :  { %1431 = vmatpush.msrb.mxu0 %v1415_v10 }
 0x658   :  { %v1381_v49 = vmax.f32 %v2843_v53, %v1365_v26 }
 0x65d   :  { %v1328_v32 = vpop.f32.mrf.mxu1 }
 0x65e   :  { %1856 = vmatmul.msk.f32.vlgmr.msrb.gmra.mxu0 %vm49_vm0, %v2518_v62  ;;  %v1366_v61 = vmul.f32 0.01, %v1328_v32 }
 0x660   :  { %v1382_v63 = vmax.f32 %v1328_v32, %v1366_v61  ;;  %v1361_v32 = vmul.f32 0.01, %v2819_v12 }
 0x662   :  { %v1377_v53 = vmax.f32 %v2819_v12, %v1361_v32 }
 0x665   :  { %v1331_v19 = vpop.f32.mrf.mxu1 }
 0x666   :  { %1857 = vmatmul.msk.f32.gmra.mxu0 %vm49_vm0, %v2527_v36  ;;  %v1367_v16 = vmul.f32 0.01, %v1331_v19 }
 0x668   :  { %v1383_v28 = vmax.f32 %v1331_v19, %v1367_v16  ;;  %v1379_v19 = vmax.f32 %v2831_v57, %v1363_v59 }
 0x66d   :  { %v1334_v35 = vpop.f32.mrf.mxu1 }
 0x66e   :  { %1858 = vmatmul.msk.f32.gmra.mxu0 %vm49_vm0, %v2534_v24  ;;  %v1368_v3 = vmul.f32 0.01, %v1334_v35 }
 0x670   :  { %v1384_v21 = vmax.f32 %v1334_v35, %v1368_v3  ;;  %v1378_v35 = vmax.f32 %v2825_v48, %v1362_v1 }
 0x675   :  { %v1337_v13 = vpop.f32.mrf.mxu1 }
 0x676   :  { %1859 = vmatmul.msk.f32.gmra.mxu0 %vm49_vm0, %v2541_v37  ;;  %v1369_v31 = vmul.f32 0.01, %v1337_v13 }
 0x678   :  { %v1385_v38 = vmax.f32 %v1337_v13, %v1369_v31 }
 0x67d   :  { %v1340_v5 = vpop.f32.mrf.mxu1 }
 0x67e   :  { %1860 = vmatmul.msk.f32.gmra.mxu0 %vm49_vm0, %v2548_v50  ;;  %v1370_v55 = vmul.f32 0.01, %v1340_v5 }
 0x680   :  { %v1386_v60 = vmax.f32 %v1340_v5, %v1370_v55  ;;  %v1393_v5 = vld [vmem:[#allocation2 + $0x50] sm:$0xff] }
 0x685   :  { %v1343_v41 = vpop.f32.mrf.mxu1 }
 0x686   :  { %1861 = vmatmul.msk.f32.gmra.mxu0 %vm49_vm0, %v2555_v22  ;;  %v1371_v58 = vmul.f32 0.01, %v1343_v41 }
 0x688   :  { %v1387_v42 = vmax.f32 %v1343_v41, %v1371_v58 }
 0x68d   :  { %v1346_v20 = vpop.f32.mrf.mxu1 }
 0x68e   :  { %1862 = vmatmul.msk.f32.gmra.mxu0 %vm49_vm0, %v2562_v2  ;;  %v1372_v44 = vmul.f32 0.01, %v1346_v20 }
 0x690   :  { %v1388_v34 = vmax.f32 %v1346_v20, %v1372_v44 }
 0x695   :  { %v1349_v51 = vpop.f32.mrf.mxu1 }
 0x696   :  { %1863 = vmatmul.msk.f32.gmra.mxu0 %vm49_vm0, %v2569_v4  ;;  %v1373_v0 = vmul.f32 0.01, %v1349_v51 }
 0x698   :  { %v1389_v17 = vmax.f32 %v1349_v51, %v1373_v0 }
 0x69d   :  { %v1352_v39 = vpop.f32.mrf.mxu1 }
 0x69e   :  { %1864 = vmatmul.msk.f32.gmra.mxu0 %vm49_vm0, %v2576_v6  ;;  %v1374_v14 = vmul.f32 0.01, %v1352_v39 }
 0x6a0   :  { %v1390_v46 = vmax.f32 %v1352_v39, %v1374_v14 }
 0x6a5   :  { %v1355_v11 = vpop.f32.mrf.mxu1 }
 0x6a6   :  { %1865 = vmatmul.msk.f32.gmra.mxu0 %vm49_vm0, %v2583_v8  ;;  %v1375_v54 = vmul.f32 0.01, %v1355_v11 }
 0x6a8   :  { %v1391_v56 = vmax.f32 %v1355_v11, %v1375_v54 }
 0x6ad   :  { %v1358_v27 = vpop.f32.mrf.mxu1 }
 0x6ae   :  { %v1376_v7 = vmul.f32 0.01, %v1358_v27  ;;  %1866 = vmatmul.msk.f32.gmra.mxu0 %vm49_vm0, %v2590_v9 }
 0x6b0   :  { %v1392_v25 = vmax.f32 %v1358_v27, %v1376_v7 }
 0x6b2   :  { %1394 = vmatpush.xpose.msrb.mxu3 %v1392_v25 }
 0x6b6   :  { %1395 = vmatpush.xpose.msrb.mxu3 %v1391_v56  ;;  %1867 = vmatmul.msk.f32.gmra.mxu0 %vm49_vm0, %v2597_v45 }
 0x6ba   :  { %1396 = vmatpush.xpose.msrb.mxu3 %v1390_v46 }
 0x6be   :  { %1397 = vmatpush.xpose.msrb.mxu3 %v1389_v17  ;;  %1868 = vmatmul.msk.f32.gmra.mxu0 %vm49_vm0, %v2604_v47 }
 0x6c2   :  { %1398 = vmatpush.xpose.msrb.mxu3 %v1388_v34 }
 0x6c6   :  { %1399 = vmatpush.xpose.msrb.mxu3 %v1387_v42  ;;  %1869 = vmatmul.msk.f32.gmra.mxu0 %vm49_vm0, %v2611_v15 }
 0x6ca   :  { %1400 = vmatpush.xpose.msrb.mxu3 %v1386_v60 }
 0x6ce   :  { %1401 = vmatpush.xpose.msrb.mxu3 %v1385_v38  ;;  %1870 = vmatmul.msk.f32.gmra.mxu0 %vm49_vm0, %v2618_v33 }
 0x6d2   :  { %1402 = vmatpush.xpose.msrb.mxu3 %v1384_v21 }
 0x6d3   :  { %v1291_v43 = vpop.f32.mrf.mxu0 }
 0x6d4   :  { %v2876_v18 = vadd.f32 %v1291_v43, %v2814_v52  ;;  %v1380_v52 = vmax.f32 %v2837_v40, %v1364_v29  ;;  %v1535_v40 = vld [vmem:[%s2972_s1 + $0x60] sm:$0xff] }
 0x6d6   :  { %1403 = vmatpush.xpose.msrb.mxu3 %v1383_v28  ;;  %1871 = vmatmul.msk.f32.gmra.mxu0 %vm49_vm0, %v2630_v30 }
 0x6da   :  { %1404 = vmatpush.xpose.msrb.mxu3 %v1382_v63 }
 0x6db   :  { %v2881_v23 = vpop.f32.mrf.mxu0 }
 0x6de   :  { %1405 = vmatpush.xpose.msrb.mxu3 %v1381_v49  ;;  %v1513_v49 = vld [vmem:[#allocation2 + $0x58] sm:$0xff] }
 0x6e2   :  { %1406 = vmatpush.xpose.msrb.mxu3 %v1380_v52 }
 0x6e3   :  { %v2887_v10 = vpop.f32.mrf.mxu0 }
 0x6e4   :  { %v1482_v43 = vmul.f32 0.01, %v2887_v10 }
 0x6e6   :  { %1407 = vmatpush.xpose.msrb.mxu3 %v1379_v19  ;;  %v1498_v26 = vmax.f32 %v2887_v10, %v1482_v43 }
 0x6ea   :  { %1408 = vmatpush.xpose.msrb.mxu3 %v1378_v35 }
 0x6eb   :  { %v2893_v13 = vpop.f32.mrf.mxu0 }
 0x6ec   :  { %v1483_v21 = vmul.f32 0.01, %v2893_v13 }
 0x6ee   :  { %1409 = vmatpush.xpose.msrb.mxu3 %v1377_v53  ;;  %v1499_v61 = vmax.f32 %v2893_v13, %v1483_v21 }
 0x6f1   :  { %1410 = vmatmul.f32.vlgmr.msrb.gmra.mxu3 %v1393_v5 }
 0x6f2   :  { %1551 = vmatpush.msra.mxu3 %v1535_v40 }
 0x6f3   :  { %v2899_v41 = vpop.f32.mrf.mxu0 }
 0x6f9   :  { %1872 = vmatmul.msk.f32.vlgmr.msra.gmra.mxu3 %vm49_vm0, %v2518_v62 }
 0x6fb   :  { %v2903_v57 = vpop.f32.mrf.mxu0 }
 0x701   :  { %1873 = vmatmul.msk.f32.gmra.mxu3 %vm49_vm0, %v2527_v36 }
 0x703   :  { %v2907_v48 = vpop.f32.mrf.mxu0 }
 0x704   :  { %v1486_v55 = vmul.f32 0.01, %v2907_v48 }
 0x706   :  { %v1502_v31 = vmax.f32 %v2907_v48, %v1486_v55 }
 0x709   :  { %1874 = vmatmul.msk.f32.gmra.mxu3 %vm49_vm0, %v2534_v24 }
 0x70b   :  { %v1451_v12 = vpop.f32.mrf.mxu0 }
 0x70c   :  { %v1487_v17 = vmul.f32 0.01, %v1451_v12 }
 0x70e   :  { %v1503_v42 = vmax.f32 %v1451_v12, %v1487_v17 }
 0x711   :  { %1875 = vmatmul.msk.f32.gmra.mxu3 %vm49_vm0, %v2541_v37 }
 0x713   :  { %v1454_v20 = vpop.f32.mrf.mxu0 }
 0x714   :  { %v1488_v46 = vmul.f32 0.01, %v1454_v20 }
 0x719   :  { %1876 = vmatmul.msk.f32.gmra.mxu3 %vm49_vm0, %v2548_v50 }
 0x71b   :  { %v1457_v51 = vpop.f32.mrf.mxu0 }
 0x71c   :  { %v1489_v0 = vmul.f32 0.01, %v1457_v51 }
 0x71e   :  { %v1505_v44 = vmax.f32 %v1457_v51, %v1489_v0 }
 0x721   :  { %1877 = vmatmul.msk.f32.gmra.mxu3 %vm49_vm0, %v2555_v22 }
 0x723   :  { %v1460_v62 = vpop.f32.mrf.mxu0 }
 0x724   :  { %v1490_v14 = vmul.f32 0.01, %v1460_v62 }
 0x729   :  { %1878 = vmatmul.msk.f32.gmra.mxu3 %vm49_vm0, %v2562_v2 }
 0x72b   :  { %v1463_v36 = vpop.f32.mrf.mxu0 }
 0x731   :  { %1879 = vmatmul.msk.f32.gmra.mxu3 %vm49_vm0, %v2569_v4 }
 0x733   :  { %v1466_v24 = vpop.f32.mrf.mxu0 }
 0x734   :  { %v1492_v54 = vmul.f32 0.01, %v1466_v24 }
 0x739   :  { %1880 = vmatmul.msk.f32.gmra.mxu3 %vm49_vm0, %v2576_v6 }
 0x73b   :  { %v1469_v37 = vpop.f32.mrf.mxu0 }
 0x73c   :  { %v1493_v6 = vmul.f32 0.01, %v1469_v37 }
 0x73e   :  { %v1509_v25 = vmax.f32 %v1469_v37, %v1493_v6 }
 0x741   :  { %1881 = vmatmul.msk.f32.gmra.mxu3 %vm49_vm0, %v2583_v8 }
 0x743   :  { %v1472_v50 = vpop.f32.mrf.mxu0 }
 0x744   :  { %v1494_v27 = vmul.f32 0.01, %v1472_v50 }
 0x746   :  { %v1510_v8 = vmax.f32 %v1472_v50, %v1494_v27 }
 0x749   :  { %1882 = vmatmul.msk.f32.gmra.mxu3 %vm49_vm0, %v2590_v9  ;;  %v1491_v9 = vmul.f32 0.01, %v1463_v36 }
 0x74b   :  { %v1475_v22 = vpop.f32.mrf.mxu0  ;;  %v1507_v56 = vmax.f32 %v1463_v36, %v1491_v9 }
 0x74c   :  { %v1495_v39 = vmul.f32 0.01, %v1475_v22 }
 0x74e   :  { %v1511_v7 = vmax.f32 %v1475_v22, %v1495_v39 }
 0x751   :  { %1883 = vmatmul.msk.f32.gmra.mxu3 %vm49_vm0, %v2597_v45  ;;  %v1508_v45 = vmax.f32 %v1466_v24, %v1492_v54  ;;  %v1963_v54 = vmov 0  }
 0x752   :  { %1893 = vset.pattern.permute.xlu0 %v1963_v54 }
 0x753   :  { %v1478_v2 = vpop.f32.mrf.mxu0 }
 0x754   :  { %v1496_v11 = vmul.f32 0.01, %v1478_v2 }
 0x756   :  { %v1512_v4 = vmax.f32 %v1478_v2, %v1496_v11 }
 0x758   :  { %1514 = vmatpush.xpose.msra.mxu2 %v1512_v4 }
 0x759   :  { %1884 = vmatmul.msk.f32.gmra.mxu3 %vm49_vm0, %v2604_v47  ;;  %v1506_v47 = vmax.f32 %v1460_v62, %v1490_v14 }
 0x75c   :  { %1515 = vmatpush.xpose.msra.mxu2 %v1511_v7 }
 0x760   :  { %1516 = vmatpush.xpose.msra.mxu2 %v1510_v8  ;;  %v1655_v8 = vld [vmem:[%s2974_s3] sm:$0xff]  ;;  %s1964_s3 = smov [#allocation5]  }
 0x761   :  { %1885 = vmatmul.msk.f32.gmra.mxu3 %vm49_vm0, %v2611_v15  ;;  %v1504_v15 = vmax.f32 %v1454_v20, %v1488_v46  ;;  %1658 = vperm.xlu0 %1893, %v1655_v8   ;;  %s1668_s28 = sshll.u32 %s1964_s3, 4  ;;  %s1669_s28 = int_to_ptr.vmem [resolvable:$true] %s1668_s28 }
 0x764   :  { %1517 = vmatpush.xpose.msra.mxu2 %v1509_v25 }
 0x768   :  { %1518 = vmatpush.xpose.msra.mxu2 %v1508_v45 }
 0x769   :  { %1886 = vmatmul.msk.f32.gmra.mxu3 %vm49_vm0, %v2618_v33  ;;  %v1485_v33 = vmul.f32 0.01, %v2903_v57 }
 0x76b   :  { %v1501_v3 = vmax.f32 %v2903_v57, %v1485_v33 }
 0x76c   :  { %1519 = vmatpush.xpose.msra.mxu2 %v1507_v56 }
 0x770   :  { %1520 = vmatpush.xpose.msra.mxu2 %v1506_v47 }
 0x771   :  { %1887 = vmatmul.msk.f32.gmra.mxu3 %vm49_vm0, %v2630_v30  ;;  %v1484_v30 = vmul.f32 0.01, %v2899_v41 }
 0x773   :  { %v1500_v38 = vmax.f32 %v2899_v41, %v1484_v30 }
 0x774   :  { %v1411_v58 = vpop.f32.mrf.mxu3  ;;  %1521 = vmatpush.xpose.msra.mxu2 %v1505_v44 }
 0x775   :  { %v2938_v34 = vadd.f32 %v1411_v58, %v2876_v18  ;;  %v1481_v18 = vmul.f32 0.01, %v2881_v23 }
 0x777   :  { %v1497_v63 = vmax.f32 %v2881_v23, %v1481_v18 }
 0x778   :  { %1522 = vmatpush.xpose.msra.mxu2 %v1504_v15 }
 0x77c   :  { %1523 = vmatpush.xpose.msra.mxu2 %v1503_v42  ;;  %v2943_v60 = vpop.f32.mrf.mxu3  ;;  %v1633_v42 = vld [vmem:[#allocation2 + $0x60] sm:$0xff] }
 0x77d   :  { %v1601_v15 = vmul.f32 0.01, %v2943_v60 }
 0x77f   :  { %v1617_v55 = vmax.f32 %v2943_v60, %v1601_v15 }
 0x780   :  { %1524 = vmatpush.xpose.msra.mxu2 %v1502_v31 }
 0x784   :  { %1525 = vmatpush.xpose.msra.mxu2 %v1501_v3  ;;  %v2948_v16 = vpop.f32.mrf.mxu3 }
 0x785   :  { %v1602_v44 = vmul.f32 0.01, %v2948_v16 }
 0x787   :  { %v1618_v58 = vmax.f32 %v2948_v16, %v1602_v44 }
 0x788   :  { %1526 = vmatpush.xpose.msra.mxu2 %v1500_v38 }
 0x78c   :  { %1527 = vmatpush.xpose.msra.mxu2 %v1499_v61  ;;  %v2953_v28 = vpop.f32.mrf.mxu3 }
 0x78d   :  { %v1603_v47 = vmul.f32 0.01, %v2953_v28 }
 0x78f   :  { %v1619_v17 = vmax.f32 %v2953_v28, %v1603_v47 }
 0x790   :  { %1528 = vmatpush.xpose.msra.mxu2 %v1498_v26 }
 0x794   :  { %1529 = vmatpush.xpose.msra.mxu2 %v1497_v63  ;;  %v1562_v29 = vpop.f32.mrf.mxu3 }
 0x795   :  { %v1604_v56 = vmul.f32 0.01, %v1562_v29 }
 0x797   :  { %1530 = vmatmul.f32.vlgmr.msra.gmra.mxu2 %v1513_v49  ;;  %v1620_v46 = vmax.f32 %v1562_v29, %v1604_v56 }
 0x79c   :  { %v1565_v59 = vpop.f32.mrf.mxu3 }
 0x79d   :  { %v1605_v45 = vmul.f32 0.01, %v1565_v59 }
 0x79f   :  { %v1621_v0 = vmax.f32 %v1565_v59, %v1605_v45 }
 0x7a4   :  { %v1568_v52 = vpop.f32.mrf.mxu3 }
 0x7a5   :  { %v1606_v25 = vmul.f32 0.01, %v1568_v52 }
 0x7a7   :  { %v1622_v14 = vmax.f32 %v1568_v52, %v1606_v25 }
 0x7ac   :  { %v1571_v1 = vpop.f32.mrf.mxu3 }
 0x7ad   :  { %v1607_v7 = vmul.f32 0.01, %v1571_v1 }
 0x7af   :  { %v1623_v9 = vmax.f32 %v1571_v1, %v1607_v7 }
 0x7b4   :  { %v1574_v19 = vpop.f32.mrf.mxu3 }
 0x7b5   :  { %v1608_v4 = vmul.f32 0.01, %v1574_v19 }
 0x7b7   :  { %v1624_v6 = vmax.f32 %v1574_v19, %v1608_v4 }
 0x7bc   :  { %v1577_v32 = vpop.f32.mrf.mxu3 }
 0x7bd   :  { %v1609_v39 = vmul.f32 0.01, %v1577_v32 }
 0x7bf   :  { %v1625_v27 = vmax.f32 %v1577_v32, %v1609_v39 }
 0x7c4   :  { %v1580_v35 = vpop.f32.mrf.mxu3 }
 0x7c5   :  { %v1610_v22 = vmul.f32 0.01, %v1580_v35 }
 0x7c7   :  { %v1626_v11 = vmax.f32 %v1580_v35, %v1610_v22 }
 0x7cc   :  { %v1583_v13 = vpop.f32.mrf.mxu3 }
 0x7cd   :  { %v1611_v37 = vmul.f32 0.01, %v1583_v13 }
 0x7cf   :  { %v1627_v2 = vmax.f32 %v1583_v13, %v1611_v37 }
 0x7d3   :  { %v1659_v3 = vpop.permute.xlu0 %1658 }
 0x7d4   :  { %v1586_v53 = vpop.f32.mrf.mxu3 }
 0x7d5   :  { %v1612_v36 = vmul.f32 0.01, %v1586_v53 }
 0x7d7   :  { %v1628_v50 = vmax.f32 %v1586_v53, %v1612_v36 }
 0x7dc   :  { %v1589_v40 = vpop.f32.mrf.mxu3 }
 0x7dd   :  { %v1613_v51 = vmul.f32 0.01, %v1589_v40 }
 0x7df   :  { %v1629_v24 = vmax.f32 %v1589_v40, %v1613_v51 }
 0x7e4   :  { %v1592_v5 = vpop.f32.mrf.mxu3 }
 0x7e5   :  { %v1614_v23 = vmul.f32 0.01, %v1592_v5 }
 0x7e7   :  { %v1630_v62 = vmax.f32 %v1592_v5, %v1614_v23 }
 0x7ec   :  { %v1595_v41 = vpop.f32.mrf.mxu3 }
 0x7ed   :  { %v1615_v48 = vmul.f32 0.01, %v1595_v41 }
 0x7ef   :  { %v1631_v20 = vmax.f32 %v1595_v41, %v1615_v48 }
 0x7f4   :  { %v1598_v57 = vpop.f32.mrf.mxu3 }
 0x7f5   :  { %v1616_v10 = vmul.f32 0.01, %v1598_v57 }
 0x7f7   :  { %v1632_v12 = vmax.f32 %v1598_v57, %v1616_v10 }
 0x7f9   :  { %1634 = vmatpush.xpose.msra.mxu0 %v1632_v12 }
 0x7fd   :  { %1635 = vmatpush.xpose.msra.mxu0 %v1631_v20 }
 0x801   :  { %1636 = vmatpush.xpose.msra.mxu0 %v1630_v62 }
 0x805   :  { %1637 = vmatpush.xpose.msra.mxu0 %v1629_v24 }
 0x809   :  { %1638 = vmatpush.xpose.msra.mxu0 %v1628_v50 }
 0x80d   :  { %1639 = vmatpush.xpose.msra.mxu0 %v1627_v2 }
 0x811   :  { %1640 = vmatpush.xpose.msra.mxu0 %v1626_v11 }
 0x815   :  { %1641 = vmatpush.xpose.msra.mxu0 %v1625_v27 }
 0x819   :  { %1642 = vmatpush.xpose.msra.mxu0 %v1624_v6 }
 0x81a   :  { %v1531_v33 = vpop.f32.mrf.mxu2 }
 0x81b   :  { %v1534_v31 = vadd.f32 %v1531_v33, %v2938_v34 }
 0x81d   :  { %1643 = vmatpush.xpose.msra.mxu0 %v1623_v9 }
 0x821   :  { %1644 = vmatpush.xpose.msra.mxu0 %v1622_v14 }
 0x825   :  { %1645 = vmatpush.xpose.msra.mxu0 %v1621_v0 }
 0x829   :  { %1646 = vmatpush.xpose.msra.mxu0 %v1620_v46 }
 0x82d   :  { %1647 = vmatpush.xpose.msra.mxu0 %v1619_v17 }
 0x831   :  { %1648 = vmatpush.xpose.msra.mxu0 %v1618_v58 }
 0x835   :  { %1649 = vmatpush.xpose.msra.mxu0 %v1617_v55 }
 0x838   :  { %1650 = vmatmul.f32.vlgmr.msra.gmra.mxu0 %v1633_v42 }
 0x8b5   :  { %v1651_v30 = vpop.f32.mrf.mxu0 }
 0x8b6   :  { %v1654_v38 = vadd.f32 %v1651_v30, %v1534_v31 }
 0x8b8   :  { %v1661_v21 = vadd.f32 %v1659_v3, %v1654_v38 }
 0x8ba   :  { %1662 = vst [vmem:[#allocation5] sm:$0xff] %v1661_v21 }
 0x8bb   :  { %1673 = dma.vmem_to_hbm [thread:$0]  %s1669_s28, 128, %s1671_s5, [#allocation4]  }
 0x8bc   :  { %1960 = dma.done.wait [#allocation4], 128  }
 0x8bd   :  { %1961 = vsyncadd [#allocation4], 4294967168 }
 0x8be   :  { %1678 = vsyncpa [#allocation3], 1 }
 0x8bf   :  { %1679 = vsyncpa [#allocation4], 1 }

</bundles_post_ra>
